<compile_context>
chip_gen: v7x
topology: tpu7x:2x2x1
jax: 0.10.0
libtpu: 0.0.40
codegen_flags: <defaults>
</compile_context>

<pallas_src>
import jax
import jax.numpy as jnp
from jax.experimental import pallas as pl
from jax.experimental.pallas import tpu as pltpu

HIDDEN = 5        # nn.LSTM(hidden_size=5)
NUM_GATES = 4     # PyTorch gate order: i, f, g, o
GATE_PITCH = 8    # per-gate sublane pitch (f32 sublane tile) -> aligned slices
BLOCK_B = 128     # batch lanes per grid step (lane-dense, vreg-pressure safe)
# NOTE: on single-TC v5e/v6e a coarser batch block (fewer grid steps) is
# preferable once B is large; BLOCK_B=128 keeps the hoisted weight broadcasts
# within the 64-vreg file and shards cleanly across both v7x TensorCores.


def lstm_last_relu_fc_kernel(x_ref, wih_ref, whh_ref, b_ref, wfc_ref, bfc_ref,
                             out_ref):
    """Full LSTM recurrence + last-step ReLU + Linear, batch-on-lanes.

    x_ref   : (T, B)          time-major input, batch on lanes
    wih_ref : (4*GP, 1)       packed W_ih      (i/f/o rows pre-scaled by 0.5)
    whh_ref : (4*GP, H)       packed W_hh      (i/f/o rows pre-scaled by 0.5)
    b_ref   : (4*GP, 1)       packed b_ih+b_hh (i/f/o rows pre-scaled by 0.5)
    wfc_ref : (GP, 1)         fc1.weight (rows H..GP-1 zero)
    bfc_ref : (1, 1)          fc1.bias
    out_ref : (1, B)          lane-dense output row
    """
    T, B = x_ref.shape
    H = whh_ref.shape[1]           # true hidden size (contraction length) = 5
    GP = wfc_ref.shape[0]          # per-gate sublane pitch = 8
    G4 = wih_ref.shape[0]          # 4 * GP = 32

    # Loop-invariant lane broadcasts, hoisted once before the recurrence.
    wih_b = jnp.broadcast_to(wih_ref[...], (G4, B))                 # (32, B)
    b_b = jnp.broadcast_to(b_ref[...], (G4, B))                     # (32, B)
    w_cols = [jnp.broadcast_to(whh_ref[:, k:k + 1], (G4, B)) for k in range(H)]
    wfc_b = jnp.broadcast_to(wfc_ref[...], (GP, B))                 # (8, B)

    h = jnp.zeros((GP, B), jnp.float32)
    c = jnp.zeros((GP, B), jnp.float32)

    # Fully unrolled recurrence (T small & static); h, c stay in vregs.
    for t in range(T):
        x_t = x_ref[t:t + 1, :]                       # (1, B) lane-dense row
        acc = wih_b * x_t + b_b                       # input proj, off h-chain
        if t > 0:                                     # h == 0 at t == 0
            for k in range(H):
                # rank-1 VPU FMA; h[k] is a sublane slice replicated down.
                acc = acc + w_cols[k] * h[k:k + 1, :]
        tt = jnp.tanh(acc)                            # ONE packed EUP op (4 gates)
        i_t = 0.5 * tt[0 * GP:1 * GP, :] + 0.5        # sigmoid via tanh fixup
        f_t = 0.5 * tt[1 * GP:2 * GP, :] + 0.5
        g_t = tt[2 * GP:3 * GP, :]
        o_t = 0.5 * tt[3 * GP:4 * GP, :] + 0.5
        c = f_t * c + i_t * g_t
        h = o_t * jnp.tanh(c)                         # only other EUP op / step

    # output[:, -1, :] -> ReLU -> fc1: multiply + sublane reduce, lane-dense store.
    z = jnp.maximum(h, 0.0) * wfc_b                   # (8, B); pad rows are 0
    out_ref[...] = jnp.sum(z, axis=0, keepdims=True) + bfc_ref[...]


def _pack_params(w_ih, w_hh, b_ih, b_hh, w_fc, b_fc):
    """Pack PyTorch-shaped params into sublane-aligned, pre-scaled tensors."""
    H = w_hh.shape[1]
    GP = GATE_PITCH
    # Pre-scale i/f/o (gates 0,1,3) by 0.5 in f32 so sigmoid(z)=0.5*tanh(z/2)+0.5
    # can be recovered from one packed tanh in the kernel.
    scale = jnp.array([0.5, 0.5, 1.0, 0.5], jnp.float32)

    wih_g = w_ih.reshape(NUM_GATES, H).astype(jnp.float32) * scale[:, None]
    whh_g = w_hh.reshape(NUM_GATES, H, H).astype(jnp.float32) * scale[:, None, None]
    b_g = (b_ih + b_hh).reshape(NUM_GATES, H).astype(jnp.float32) * scale[:, None]

    wih_p = (jnp.zeros((NUM_GATES, GP), jnp.float32)
             .at[:, :H].set(wih_g).reshape(NUM_GATES * GP, 1))
    whh_p = (jnp.zeros((NUM_GATES, GP, H), jnp.float32)
             .at[:, :H, :].set(whh_g).reshape(NUM_GATES * GP, H))
    b_p = (jnp.zeros((NUM_GATES, GP), jnp.float32)
           .at[:, :H].set(b_g).reshape(NUM_GATES * GP, 1))
    wfc_p = (jnp.zeros((GP, 1), jnp.float32)
             .at[:H, 0].set(w_fc[0].astype(jnp.float32)))
    bfc_p = b_fc.reshape(1, 1).astype(jnp.float32)
    return wih_p, whh_p, b_p, wfc_p, bfc_p


def lstm_model_forward(x, params):
    """x: (B, T, 1) float32 -> (B, 1) float32, matching LSTMModel.forward."""
    w_ih, w_hh, b_ih, b_hh, w_fc, b_fc = params
    B, T, _ = x.shape
    H = w_hh.shape[1]
    GP = GATE_PITCH

    wih_p, whh_p, b_p, wfc_p, bfc_p = _pack_params(w_ih, w_hh, b_ih, b_hh,
                                                   w_fc, b_fc)

    # (B, T, 1) -> (T, B): squeeze the size-1 feature dim (lane-dense x DMA),
    # time-major, batch padded to a multiple of the lane-block.
    B_pad = pl.cdiv(B, BLOCK_B) * BLOCK_B
    x_tb = jnp.transpose(x[:, :, 0], (1, 0)).astype(jnp.float32)   # (T, B)
    if B_pad != B:
        x_tb = jnp.pad(x_tb, ((0, 0), (0, B_pad - B)))

    out = pl.pallas_call(
        lstm_last_relu_fc_kernel,
        out_shape=jax.ShapeDtypeStruct((1, B_pad), jnp.float32),
        grid=(B_pad // BLOCK_B,),
        in_specs=[
            pl.BlockSpec((T, BLOCK_B), lambda i: (0, i)),            # x
            pl.BlockSpec((NUM_GATES * GP, 1), lambda i: (0, 0)),     # W_ih
            pl.BlockSpec((NUM_GATES * GP, H), lambda i: (0, 0)),     # W_hh
            pl.BlockSpec((NUM_GATES * GP, 1), lambda i: (0, 0)),     # bias
            pl.BlockSpec((GP, 1), lambda i: (0, 0)),                 # fc1.weight
            pl.BlockSpec((1, 1), lambda i: (0, 0)),                  # fc1.bias
        ],
        out_specs=pl.BlockSpec((1, BLOCK_B), lambda i: (0, i)),
        compiler_params=pltpu.CompilerParams(
            dimension_semantics=("parallel",)),
    )(x_tb, wih_p, whh_p, b_p, wfc_p, bfc_p)

    return out[0, :B][:, None]


def init_params(key, H=HIDDEN):
    """Deterministic parameter init with PyTorch LSTM/Linear shapes."""
    ks = jax.random.split(key, 6)
    s = 1.0 / jnp.sqrt(jnp.float32(H))
    w_ih = jax.random.uniform(ks[0], (4 * H, 1), jnp.float32, -s, s)   # weight_ih_l0
    w_hh = jax.random.uniform(ks[1], (4 * H, H), jnp.float32, -s, s)   # weight_hh_l0
    b_ih = jax.random.uniform(ks[2], (4 * H,), jnp.float32, -s, s)     # bias_ih_l0
    b_hh = jax.random.uniform(ks[3], (4 * H,), jnp.float32, -s, s)     # bias_hh_l0
    w_fc = jax.random.uniform(ks[4], (1, H), jnp.float32, -s, s)       # fc1.weight
    b_fc = jax.random.uniform(ks[5], (1,), jnp.float32, -s, s)         # fc1.bias
    return w_ih, w_hh, b_ih, b_hh, w_fc, b_fc


def ref_forward(x, params):
    """Pure-JAX reference of LSTMModel.forward (for correctness check)."""
    w_ih, w_hh, b_ih, b_hh, w_fc, b_fc = params
    B, T, _ = x.shape
    H = w_hh.shape[1]
    h = jnp.zeros((B, H), jnp.float32)
    c = jnp.zeros((B, H), jnp.float32)
    for t in range(T):
        g = x[:, t, :] @ w_ih.T + h @ w_hh.T + b_ih + b_hh
        i = jax.nn.sigmoid(g[:, 0:H])
        f = jax.nn.sigmoid(g[:, H:2 * H])
        gg = jnp.tanh(g[:, 2 * H:3 * H])
        o = jax.nn.sigmoid(g[:, 3 * H:4 * H])
        c = f * c + i * gg
        h = o * jnp.tanh(c)
    return jnp.maximum(h, 0.0) @ w_fc.T + b_fc


if __name__ == "__main__":
    key = jax.random.PRNGKey(0)
    k_param, k_x = jax.random.split(key)

    B, T = 2, 8
    x = jax.random.normal(k_x, (B, T, 1), jnp.float32)
    params = init_params(k_param)

    out = jax.block_until_ready(lstm_model_forward(x, params))
    ref = jax.block_until_ready(ref_forward(x, params))

    assert out.shape == (B, 1), out.shape
    assert jnp.allclose(out, ref, atol=1e-5, rtol=1e-4), (out, ref)
    print("KERNEL_OK")
</pallas_src>

<mosaic_0001>
module attributes {stable_mosaic.version = 11 : i64} {
  func.func @lstm_last_relu_fc_kernel(%arg0: i32, %arg1: memref<8x128xf32, #tpu.memory_space<vmem>>, %arg2: memref<32x1xf32, #tpu.memory_space<vmem>>, %arg3: memref<32x5xf32, #tpu.memory_space<vmem>>, %arg4: memref<32x1xf32, #tpu.memory_space<vmem>>, %arg5: memref<8x1xf32, #tpu.memory_space<vmem>>, %arg6: memref<1x1xf32, #tpu.memory_space<vmem>>, %arg7: memref<1x128xf32, #tpu.memory_space<vmem>>) attributes {dimension_semantics = [#tpu.dimension_semantics<parallel>], iteration_bounds = array<i64: 1>, scalar_prefetch = 0 : i64, scratch_operands = 0 : i64, tpu.core_type = #tpu.core_type<tc>, window_params = [{transform_indices = @transform_0, window_bounds = array<i64: 8, 128>}, {pipeline_mode = #tpu.pipeline_mode<synchronous>, transform_indices = @transform_1, window_bounds = array<i64: 32, 1>}, {pipeline_mode = #tpu.pipeline_mode<synchronous>, transform_indices = @transform_2, window_bounds = array<i64: 32, 5>}, {pipeline_mode = #tpu.pipeline_mode<synchronous>, transform_indices = @transform_3, window_bounds = array<i64: 32, 1>}, {pipeline_mode = #tpu.pipeline_mode<synchronous>, transform_indices = @transform_4, window_bounds = array<i64: 8, 1>}, {pipeline_mode = #tpu.pipeline_mode<synchronous>, transform_indices = @transform_5, window_bounds = array<i64: 1, 1>}, {transform_indices = @transform_6, window_bounds = array<i64: 1, 128>}]} {
    %c0 = arith.constant 0 : index
    %c0_0 = arith.constant 0 : index
    %0 = vector.load %arg2[%c0, %c0_0] : memref<32x1xf32, #tpu.memory_space<vmem>>, vector<32x1xf32>
    %1 = vector.shape_cast %0 : vector<32x1xf32> to vector<32x1xf32>
    %2 = vector.broadcast %1 : vector<32x1xf32> to vector<32x128xf32>
    %c0_1 = arith.constant 0 : index
    %c0_2 = arith.constant 0 : index
    %3 = vector.load %arg4[%c0_1, %c0_2] : memref<32x1xf32, #tpu.memory_space<vmem>>, vector<32x1xf32>
    %4 = vector.shape_cast %3 : vector<32x1xf32> to vector<32x1xf32>
    %5 = vector.broadcast %4 : vector<32x1xf32> to vector<32x128xf32>
    %c0_3 = arith.constant 0 : index
    %c0_4 = arith.constant 0 : index
    %6 = vector.load %arg3[%c0_3, %c0_4] : memref<32x5xf32, #tpu.memory_space<vmem>>, vector<32x1xf32>
    %7 = vector.shape_cast %6 : vector<32x1xf32> to vector<32x1xf32>
    %8 = vector.broadcast %7 : vector<32x1xf32> to vector<32x128xf32>
    %c0_5 = arith.constant 0 : index
    %c1 = arith.constant 1 : index
    %9 = vector.load %arg3[%c0_5, %c1] : memref<32x5xf32, #tpu.memory_space<vmem>>, vector<32x1xf32>
    %10 = vector.shape_cast %9 : vector<32x1xf32> to vector<32x1xf32>
    %11 = vector.broadcast %10 : vector<32x1xf32> to vector<32x128xf32>
    %c0_6 = arith.constant 0 : index
    %c2 = arith.constant 2 : index
    %12 = vector.load %arg3[%c0_6, %c2] : memref<32x5xf32, #tpu.memory_space<vmem>>, vector<32x1xf32>
    %13 = vector.shape_cast %12 : vector<32x1xf32> to vector<32x1xf32>
    %14 = vector.broadcast %13 : vector<32x1xf32> to vector<32x128xf32>
    %c0_7 = arith.constant 0 : index
    %c3 = arith.constant 3 : index
    %15 = vector.load %arg3[%c0_7, %c3] : memref<32x5xf32, #tpu.memory_space<vmem>>, vector<32x1xf32>
    %16 = vector.shape_cast %15 : vector<32x1xf32> to vector<32x1xf32>
    %17 = vector.broadcast %16 : vector<32x1xf32> to vector<32x128xf32>
    %c0_8 = arith.constant 0 : index
    %c4 = arith.constant 4 : index
    %18 = vector.load %arg3[%c0_8, %c4] : memref<32x5xf32, #tpu.memory_space<vmem>>, vector<32x1xf32>
    %19 = vector.shape_cast %18 : vector<32x1xf32> to vector<32x1xf32>
    %20 = vector.broadcast %19 : vector<32x1xf32> to vector<32x128xf32>
    %c0_9 = arith.constant 0 : index
    %c0_10 = arith.constant 0 : index
    %21 = vector.load %arg5[%c0_9, %c0_10] : memref<8x1xf32, #tpu.memory_space<vmem>>, vector<8x1xf32>
    %22 = vector.shape_cast %21 : vector<8x1xf32> to vector<8x1xf32>
    %23 = vector.broadcast %22 : vector<8x1xf32> to vector<8x128xf32>
    %cst = arith.constant 0.000000e+00 : f32
    %24 = vector.broadcast %cst : f32 to vector<8x128xf32>
    %c0_11 = arith.constant 0 : index
    %c0_12 = arith.constant 0 : index
    %25 = vector.load %arg1[%c0_11, %c0_12] : memref<8x128xf32, #tpu.memory_space<vmem>>, vector<1x128xf32>
    %26 = vector.broadcast %25 : vector<1x128xf32> to vector<32x128xf32>
    %27 = arith.mulf %2, %26 : vector<32x128xf32>
    %28 = arith.addf %27, %5 : vector<32x128xf32>
    %29 = math.tanh %28 : vector<32x128xf32>
    %30 = vector.extract_strided_slice %29 {offsets = [0, 0], sizes = [8, 128], strides = [1, 1]} : vector<32x128xf32> to vector<8x128xf32>
    %cst_13 = arith.constant 5.000000e-01 : f32
    %31 = vector.broadcast %cst_13 : f32 to vector<8x128xf32>
    %32 = arith.mulf %31, %30 : vector<8x128xf32>
    %cst_14 = arith.constant 5.000000e-01 : f32
    %33 = vector.broadcast %cst_14 : f32 to vector<8x128xf32>
    %34 = arith.addf %32, %33 : vector<8x128xf32>
    %35 = vector.extract_strided_slice %29 {offsets = [8, 0], sizes = [8, 128], strides = [1, 1]} : vector<32x128xf32> to vector<8x128xf32>
    %cst_15 = arith.constant 5.000000e-01 : f32
    %36 = vector.broadcast %cst_15 : f32 to vector<8x128xf32>
    %37 = arith.mulf %36, %35 : vector<8x128xf32>
    %cst_16 = arith.constant 5.000000e-01 : f32
    %38 = vector.broadcast %cst_16 : f32 to vector<8x128xf32>
    %39 = arith.addf %37, %38 : vector<8x128xf32>
    %40 = vector.extract_strided_slice %29 {offsets = [16, 0], sizes = [8, 128], strides = [1, 1]} : vector<32x128xf32> to vector<8x128xf32>
    %41 = vector.extract_strided_slice %29 {offsets = [24, 0], sizes = [8, 128], strides = [1, 1]} : vector<32x128xf32> to vector<8x128xf32>
    %cst_17 = arith.constant 5.000000e-01 : f32
    %42 = vector.broadcast %cst_17 : f32 to vector<8x128xf32>
    %43 = arith.mulf %42, %41 : vector<8x128xf32>
    %cst_18 = arith.constant 5.000000e-01 : f32
    %44 = vector.broadcast %cst_18 : f32 to vector<8x128xf32>
    %45 = arith.addf %43, %44 : vector<8x128xf32>
    %46 = arith.mulf %39, %24 : vector<8x128xf32>
    %47 = arith.mulf %34, %40 : vector<8x128xf32>
    %48 = arith.addf %46, %47 : vector<8x128xf32>
    %49 = math.tanh %48 : vector<8x128xf32>
    %50 = arith.mulf %45, %49 : vector<8x128xf32>
    %c1_19 = arith.constant 1 : index
    %c0_20 = arith.constant 0 : index
    %51 = vector.load %arg1[%c1_19, %c0_20] : memref<8x128xf32, #tpu.memory_space<vmem>>, vector<1x128xf32>
    %52 = vector.broadcast %51 : vector<1x128xf32> to vector<32x128xf32>
    %53 = arith.mulf %2, %52 : vector<32x128xf32>
    %54 = arith.addf %53, %5 : vector<32x128xf32>
    %55 = vector.extract_strided_slice %50 {offsets = [0, 0], sizes = [1, 128], strides = [1, 1]} : vector<8x128xf32> to vector<1x128xf32>
    %56 = vector.broadcast %55 : vector<1x128xf32> to vector<32x128xf32>
    %57 = arith.mulf %8, %56 : vector<32x128xf32>
    %58 = arith.addf %54, %57 : vector<32x128xf32>
    %59 = vector.extract_strided_slice %50 {offsets = [1, 0], sizes = [1, 128], strides = [1, 1]} : vector<8x128xf32> to vector<1x128xf32>
    %60 = vector.broadcast %59 : vector<1x128xf32> to vector<32x128xf32>
    %61 = arith.mulf %11, %60 : vector<32x128xf32>
    %62 = arith.addf %58, %61 : vector<32x128xf32>
    %63 = vector.extract_strided_slice %50 {offsets = [2, 0], sizes = [1, 128], strides = [1, 1]} : vector<8x128xf32> to vector<1x128xf32>
    %64 = vector.broadcast %63 : vector<1x128xf32> to vector<32x128xf32>
    %65 = arith.mulf %14, %64 : vector<32x128xf32>
    %66 = arith.addf %62, %65 : vector<32x128xf32>
    %67 = vector.extract_strided_slice %50 {offsets = [3, 0], sizes = [1, 128], strides = [1, 1]} : vector<8x128xf32> to vector<1x128xf32>
    %68 = vector.broadcast %67 : vector<1x128xf32> to vector<32x128xf32>
    %69 = arith.mulf %17, %68 : vector<32x128xf32>
    %70 = arith.addf %66, %69 : vector<32x128xf32>
    %71 = vector.extract_strided_slice %50 {offsets = [4, 0], sizes = [1, 128], strides = [1, 1]} : vector<8x128xf32> to vector<1x128xf32>
    %72 = vector.broadcast %71 : vector<1x128xf32> to vector<32x128xf32>
    %73 = arith.mulf %20, %72 : vector<32x128xf32>
    %74 = arith.addf %70, %73 : vector<32x128xf32>
    %75 = math.tanh %74 : vector<32x128xf32>
    %76 = vector.extract_strided_slice %75 {offsets = [0, 0], sizes = [8, 128], strides = [1, 1]} : vector<32x128xf32> to vector<8x128xf32>
    %cst_21 = arith.constant 5.000000e-01 : f32
    %77 = vector.broadcast %cst_21 : f32 to vector<8x128xf32>
    %78 = arith.mulf %77, %76 : vector<8x128xf32>
    %cst_22 = arith.constant 5.000000e-01 : f32
    %79 = vector.broadcast %cst_22 : f32 to vector<8x128xf32>
    %80 = arith.addf %78, %79 : vector<8x128xf32>
    %81 = vector.extract_strided_slice %75 {offsets = [8, 0], sizes = [8, 128], strides = [1, 1]} : vector<32x128xf32> to vector<8x128xf32>
    %cst_23 = arith.constant 5.000000e-01 : f32
    %82 = vector.broadcast %cst_23 : f32 to vector<8x128xf32>
    %83 = arith.mulf %82, %81 : vector<8x128xf32>
    %cst_24 = arith.constant 5.000000e-01 : f32
    %84 = vector.broadcast %cst_24 : f32 to vector<8x128xf32>
    %85 = arith.addf %83, %84 : vector<8x128xf32>
    %86 = vector.extract_strided_slice %75 {offsets = [16, 0], sizes = [8, 128], strides = [1, 1]} : vector<32x128xf32> to vector<8x128xf32>
    %87 = vector.extract_strided_slice %75 {offsets = [24, 0], sizes = [8, 128], strides = [1, 1]} : vector<32x128xf32> to vector<8x128xf32>
    %cst_25 = arith.constant 5.000000e-01 : f32
    %88 = vector.broadcast %cst_25 : f32 to vector<8x128xf32>
    %89 = arith.mulf %88, %87 : vector<8x128xf32>
    %cst_26 = arith.constant 5.000000e-01 : f32
    %90 = vector.broadcast %cst_26 : f32 to vector<8x128xf32>
    %91 = arith.addf %89, %90 : vector<8x128xf32>
    %92 = arith.mulf %85, %48 : vector<8x128xf32>
    %93 = arith.mulf %80, %86 : vector<8x128xf32>
    %94 = arith.addf %92, %93 : vector<8x128xf32>
    %95 = math.tanh %94 : vector<8x128xf32>
    %96 = arith.mulf %91, %95 : vector<8x128xf32>
    %c2_27 = arith.constant 2 : index
    %c0_28 = arith.constant 0 : index
    %97 = vector.load %arg1[%c2_27, %c0_28] : memref<8x128xf32, #tpu.memory_space<vmem>>, vector<1x128xf32>
    %98 = vector.broadcast %97 : vector<1x128xf32> to vector<32x128xf32>
    %99 = arith.mulf %2, %98 : vector<32x128xf32>
    %100 = arith.addf %99, %5 : vector<32x128xf32>
    %101 = vector.extract_strided_slice %96 {offsets = [0, 0], sizes = [1, 128], strides = [1, 1]} : vector<8x128xf32> to vector<1x128xf32>
    %102 = vector.broadcast %101 : vector<1x128xf32> to vector<32x128xf32>
    %103 = arith.mulf %8, %102 : vector<32x128xf32>
    %104 = arith.addf %100, %103 : vector<32x128xf32>
    %105 = vector.extract_strided_slice %96 {offsets = [1, 0], sizes = [1, 128], strides = [1, 1]} : vector<8x128xf32> to vector<1x128xf32>
    %106 = vector.broadcast %105 : vector<1x128xf32> to vector<32x128xf32>
    %107 = arith.mulf %11, %106 : vector<32x128xf32>
    %108 = arith.addf %104, %107 : vector<32x128xf32>
    %109 = vector.extract_strided_slice %96 {offsets = [2, 0], sizes = [1, 128], strides = [1, 1]} : vector<8x128xf32> to vector<1x128xf32>
    %110 = vector.broadcast %109 : vector<1x128xf32> to vector<32x128xf32>
    %111 = arith.mulf %14, %110 : vector<32x128xf32>
    %112 = arith.addf %108, %111 : vector<32x128xf32>
    %113 = vector.extract_strided_slice %96 {offsets = [3, 0], sizes = [1, 128], strides = [1, 1]} : vector<8x128xf32> to vector<1x128xf32>
    %114 = vector.broadcast %113 : vector<1x128xf32> to vector<32x128xf32>
    %115 = arith.mulf %17, %114 : vector<32x128xf32>
    %116 = arith.addf %112, %115 : vector<32x128xf32>
    %117 = vector.extract_strided_slice %96 {offsets = [4, 0], sizes = [1, 128], strides = [1, 1]} : vector<8x128xf32> to vector<1x128xf32>
    %118 = vector.broadcast %117 : vector<1x128xf32> to vector<32x128xf32>
    %119 = arith.mulf %20, %118 : vector<32x128xf32>
    %120 = arith.addf %116, %119 : vector<32x128xf32>
    %121 = math.tanh %120 : vector<32x128xf32>
    %122 = vector.extract_strided_slice %121 {offsets = [0, 0], sizes = [8, 128], strides = [1, 1]} : vector<32x128xf32> to vector<8x128xf32>
    %cst_29 = arith.constant 5.000000e-01 : f32
    %123 = vector.broadcast %cst_29 : f32 to vector<8x128xf32>
    %124 = arith.mulf %123, %122 : vector<8x128xf32>
    %cst_30 = arith.constant 5.000000e-01 : f32
    %125 = vector.broadcast %cst_30 : f32 to vector<8x128xf32>
    %126 = arith.addf %124, %125 : vector<8x128xf32>
    %127 = vector.extract_strided_slice %121 {offsets = [8, 0], sizes = [8, 128], strides = [1, 1]} : vector<32x128xf32> to vector<8x128xf32>
    %cst_31 = arith.constant 5.000000e-01 : f32
    %128 = vector.broadcast %cst_31 : f32 to vector<8x128xf32>
    %129 = arith.mulf %128, %127 : vector<8x128xf32>
    %cst_32 = arith.constant 5.000000e-01 : f32
    %130 = vector.broadcast %cst_32 : f32 to vector<8x128xf32>
    %131 = arith.addf %129, %130 : vector<8x128xf32>
    %132 = vector.extract_strided_slice %121 {offsets = [16, 0], sizes = [8, 128], strides = [1, 1]} : vector<32x128xf32> to vector<8x128xf32>
    %133 = vector.extract_strided_slice %121 {offsets = [24, 0], sizes = [8, 128], strides = [1, 1]} : vector<32x128xf32> to vector<8x128xf32>
    %cst_33 = arith.constant 5.000000e-01 : f32
    %134 = vector.broadcast %cst_33 : f32 to vector<8x128xf32>
    %135 = arith.mulf %134, %133 : vector<8x128xf32>
    %cst_34 = arith.constant 5.000000e-01 : f32
    %136 = vector.broadcast %cst_34 : f32 to vector<8x128xf32>
    %137 = arith.addf %135, %136 : vector<8x128xf32>
    %138 = arith.mulf %131, %94 : vector<8x128xf32>
    %139 = arith.mulf %126, %132 : vector<8x128xf32>
    %140 = arith.addf %138, %139 : vector<8x128xf32>
    %141 = math.tanh %140 : vector<8x128xf32>
    %142 = arith.mulf %137, %141 : vector<8x128xf32>
    %c3_35 = arith.constant 3 : index
    %c0_36 = arith.constant 0 : index
    %143 = vector.load %arg1[%c3_35, %c0_36] : memref<8x128xf32, #tpu.memory_space<vmem>>, vector<1x128xf32>
    %144 = vector.broadcast %143 : vector<1x128xf32> to vector<32x128xf32>
    %145 = arith.mulf %2, %144 : vector<32x128xf32>
    %146 = arith.addf %145, %5 : vector<32x128xf32>
    %147 = vector.extract_strided_slice %142 {offsets = [0, 0], sizes = [1, 128], strides = [1, 1]} : vector<8x128xf32> to vector<1x128xf32>
    %148 = vector.broadcast %147 : vector<1x128xf32> to vector<32x128xf32>
    %149 = arith.mulf %8, %148 : vector<32x128xf32>
    %150 = arith.addf %146, %149 : vector<32x128xf32>
    %151 = vector.extract_strided_slice %142 {offsets = [1, 0], sizes = [1, 128], strides = [1, 1]} : vector<8x128xf32> to vector<1x128xf32>
    %152 = vector.broadcast %151 : vector<1x128xf32> to vector<32x128xf32>
    %153 = arith.mulf %11, %152 : vector<32x128xf32>
    %154 = arith.addf %150, %153 : vector<32x128xf32>
    %155 = vector.extract_strided_slice %142 {offsets = [2, 0], sizes = [1, 128], strides = [1, 1]} : vector<8x128xf32> to vector<1x128xf32>
    %156 = vector.broadcast %155 : vector<1x128xf32> to vector<32x128xf32>
    %157 = arith.mulf %14, %156 : vector<32x128xf32>
    %158 = arith.addf %154, %157 : vector<32x128xf32>
    %159 = vector.extract_strided_slice %142 {offsets = [3, 0], sizes = [1, 128], strides = [1, 1]} : vector<8x128xf32> to vector<1x128xf32>
    %160 = vector.broadcast %159 : vector<1x128xf32> to vector<32x128xf32>
    %161 = arith.mulf %17, %160 : vector<32x128xf32>
    %162 = arith.addf %158, %161 : vector<32x128xf32>
    %163 = vector.extract_strided_slice %142 {offsets = [4, 0], sizes = [1, 128], strides = [1, 1]} : vector<8x128xf32> to vector<1x128xf32>
    %164 = vector.broadcast %163 : vector<1x128xf32> to vector<32x128xf32>
    %165 = arith.mulf %20, %164 : vector<32x128xf32>
    %166 = arith.addf %162, %165 : vector<32x128xf32>
    %167 = math.tanh %166 : vector<32x128xf32>
    %168 = vector.extract_strided_slice %167 {offsets = [0, 0], sizes = [8, 128], strides = [1, 1]} : vector<32x128xf32> to vector<8x128xf32>
    %cst_37 = arith.constant 5.000000e-01 : f32
    %169 = vector.broadcast %cst_37 : f32 to vector<8x128xf32>
    %170 = arith.mulf %169, %168 : vector<8x128xf32>
    %cst_38 = arith.constant 5.000000e-01 : f32
    %171 = vector.broadcast %cst_38 : f32 to vector<8x128xf32>
    %172 = arith.addf %170, %171 : vector<8x128xf32>
    %173 = vector.extract_strided_slice %167 {offsets = [8, 0], sizes = [8, 128], strides = [1, 1]} : vector<32x128xf32> to vector<8x128xf32>
    %cst_39 = arith.constant 5.000000e-01 : f32
    %174 = vector.broadcast %cst_39 : f32 to vector<8x128xf32>
    %175 = arith.mulf %174, %173 : vector<8x128xf32>
    %cst_40 = arith.constant 5.000000e-01 : f32
    %176 = vector.broadcast %cst_40 : f32 to vector<8x128xf32>
    %177 = arith.addf %175, %176 : vector<8x128xf32>
    %178 = vector.extract_strided_slice %167 {offsets = [16, 0], sizes = [8, 128], strides = [1, 1]} : vector<32x128xf32> to vector<8x128xf32>
    %179 = vector.extract_strided_slice %167 {offsets = [24, 0], sizes = [8, 128], strides = [1, 1]} : vector<32x128xf32> to vector<8x128xf32>
    %cst_41 = arith.constant 5.000000e-01 : f32
    %180 = vector.broadcast %cst_41 : f32 to vector<8x128xf32>
    %181 = arith.mulf %180, %179 : vector<8x128xf32>
    %cst_42 = arith.constant 5.000000e-01 : f32
    %182 = vector.broadcast %cst_42 : f32 to vector<8x128xf32>
    %183 = arith.addf %181, %182 : vector<8x128xf32>
    %184 = arith.mulf %177, %140 : vector<8x128xf32>
    %185 = arith.mulf %172, %178 : vector<8x128xf32>
    %186 = arith.addf %184, %185 : vector<8x128xf32>
    %187 = math.tanh %186 : vector<8x128xf32>
    %188 = arith.mulf %183, %187 : vector<8x128xf32>
    %c4_43 = arith.constant 4 : index
    %c0_44 = arith.constant 0 : index
    %189 = vector.load %arg1[%c4_43, %c0_44] : memref<8x128xf32, #tpu.memory_space<vmem>>, vector<1x128xf32>
    %190 = vector.broadcast %189 : vector<1x128xf32> to vector<32x128xf32>
    %191 = arith.mulf %2, %190 : vector<32x128xf32>
    %192 = arith.addf %191, %5 : vector<32x128xf32>
    %193 = vector.extract_strided_slice %188 {offsets = [0, 0], sizes = [1, 128], strides = [1, 1]} : vector<8x128xf32> to vector<1x128xf32>
    %194 = vector.broadcast %193 : vector<1x128xf32> to vector<32x128xf32>
    %195 = arith.mulf %8, %194 : vector<32x128xf32>
    %196 = arith.addf %192, %195 : vector<32x128xf32>
    %197 = vector.extract_strided_slice %188 {offsets = [1, 0], sizes = [1, 128], strides = [1, 1]} : vector<8x128xf32> to vector<1x128xf32>
    %198 = vector.broadcast %197 : vector<1x128xf32> to vector<32x128xf32>
    %199 = arith.mulf %11, %198 : vector<32x128xf32>
    %200 = arith.addf %196, %199 : vector<32x128xf32>
    %201 = vector.extract_strided_slice %188 {offsets = [2, 0], sizes = [1, 128], strides = [1, 1]} : vector<8x128xf32> to vector<1x128xf32>
    %202 = vector.broadcast %201 : vector<1x128xf32> to vector<32x128xf32>
    %203 = arith.mulf %14, %202 : vector<32x128xf32>
    %204 = arith.addf %200, %203 : vector<32x128xf32>
    %205 = vector.extract_strided_slice %188 {offsets = [3, 0], sizes = [1, 128], strides = [1, 1]} : vector<8x128xf32> to vector<1x128xf32>
    %206 = vector.broadcast %205 : vector<1x128xf32> to vector<32x128xf32>
    %207 = arith.mulf %17, %206 : vector<32x128xf32>
    %208 = arith.addf %204, %207 : vector<32x128xf32>
    %209 = vector.extract_strided_slice %188 {offsets = [4, 0], sizes = [1, 128], strides = [1, 1]} : vector<8x128xf32> to vector<1x128xf32>
    %210 = vector.broadcast %209 : vector<1x128xf32> to vector<32x128xf32>
    %211 = arith.mulf %20, %210 : vector<32x128xf32>
    %212 = arith.addf %208, %211 : vector<32x128xf32>
    %213 = math.tanh %212 : vector<32x128xf32>
    %214 = vector.extract_strided_slice %213 {offsets = [0, 0], sizes = [8, 128], strides = [1, 1]} : vector<32x128xf32> to vector<8x128xf32>
    %cst_45 = arith.constant 5.000000e-01 : f32
    %215 = vector.broadcast %cst_45 : f32 to vector<8x128xf32>
    %216 = arith.mulf %215, %214 : vector<8x128xf32>
    %cst_46 = arith.constant 5.000000e-01 : f32
    %217 = vector.broadcast %cst_46 : f32 to vector<8x128xf32>
    %218 = arith.addf %216, %217 : vector<8x128xf32>
    %219 = vector.extract_strided_slice %213 {offsets = [8, 0], sizes = [8, 128], strides = [1, 1]} : vector<32x128xf32> to vector<8x128xf32>
    %cst_47 = arith.constant 5.000000e-01 : f32
    %220 = vector.broadcast %cst_47 : f32 to vector<8x128xf32>
    %221 = arith.mulf %220, %219 : vector<8x128xf32>
    %cst_48 = arith.constant 5.000000e-01 : f32
    %222 = vector.broadcast %cst_48 : f32 to vector<8x128xf32>
    %223 = arith.addf %221, %222 : vector<8x128xf32>
    %224 = vector.extract_strided_slice %213 {offsets = [16, 0], sizes = [8, 128], strides = [1, 1]} : vector<32x128xf32> to vector<8x128xf32>
    %225 = vector.extract_strided_slice %213 {offsets = [24, 0], sizes = [8, 128], strides = [1, 1]} : vector<32x128xf32> to vector<8x128xf32>
    %cst_49 = arith.constant 5.000000e-01 : f32
    %226 = vector.broadcast %cst_49 : f32 to vector<8x128xf32>
    %227 = arith.mulf %226, %225 : vector<8x128xf32>
    %cst_50 = arith.constant 5.000000e-01 : f32
    %228 = vector.broadcast %cst_50 : f32 to vector<8x128xf32>
    %229 = arith.addf %227, %228 : vector<8x128xf32>
    %230 = arith.mulf %223, %186 : vector<8x128xf32>
    %231 = arith.mulf %218, %224 : vector<8x128xf32>
    %232 = arith.addf %230, %231 : vector<8x128xf32>
    %233 = math.tanh %232 : vector<8x128xf32>
    %234 = arith.mulf %229, %233 : vector<8x128xf32>
    %c5 = arith.constant 5 : index
    %c0_51 = arith.constant 0 : index
    %235 = vector.load %arg1[%c5, %c0_51] : memref<8x128xf32, #tpu.memory_space<vmem>>, vector<1x128xf32>
    %236 = vector.broadcast %235 : vector<1x128xf32> to vector<32x128xf32>
    %237 = arith.mulf %2, %236 : vector<32x128xf32>
    %238 = arith.addf %237, %5 : vector<32x128xf32>
    %239 = vector.extract_strided_slice %234 {offsets = [0, 0], sizes = [1, 128], strides = [1, 1]} : vector<8x128xf32> to vector<1x128xf32>
    %240 = vector.broadcast %239 : vector<1x128xf32> to vector<32x128xf32>
    %241 = arith.mulf %8, %240 : vector<32x128xf32>
    %242 = arith.addf %238, %241 : vector<32x128xf32>
    %243 = vector.extract_strided_slice %234 {offsets = [1, 0], sizes = [1, 128], strides = [1, 1]} : vector<8x128xf32> to vector<1x128xf32>
    %244 = vector.broadcast %243 : vector<1x128xf32> to vector<32x128xf32>
    %245 = arith.mulf %11, %244 : vector<32x128xf32>
    %246 = arith.addf %242, %245 : vector<32x128xf32>
    %247 = vector.extract_strided_slice %234 {offsets = [2, 0], sizes = [1, 128], strides = [1, 1]} : vector<8x128xf32> to vector<1x128xf32>
    %248 = vector.broadcast %247 : vector<1x128xf32> to vector<32x128xf32>
    %249 = arith.mulf %14, %248 : vector<32x128xf32>
    %250 = arith.addf %246, %249 : vector<32x128xf32>
    %251 = vector.extract_strided_slice %234 {offsets = [3, 0], sizes = [1, 128], strides = [1, 1]} : vector<8x128xf32> to vector<1x128xf32>
    %252 = vector.broadcast %251 : vector<1x128xf32> to vector<32x128xf32>
    %253 = arith.mulf %17, %252 : vector<32x128xf32>
    %254 = arith.addf %250, %253 : vector<32x128xf32>
    %255 = vector.extract_strided_slice %234 {offsets = [4, 0], sizes = [1, 128], strides = [1, 1]} : vector<8x128xf32> to vector<1x128xf32>
    %256 = vector.broadcast %255 : vector<1x128xf32> to vector<32x128xf32>
    %257 = arith.mulf %20, %256 : vector<32x128xf32>
    %258 = arith.addf %254, %257 : vector<32x128xf32>
    %259 = math.tanh %258 : vector<32x128xf32>
    %260 = vector.extract_strided_slice %259 {offsets = [0, 0], sizes = [8, 128], strides = [1, 1]} : vector<32x128xf32> to vector<8x128xf32>
    %cst_52 = arith.constant 5.000000e-01 : f32
    %261 = vector.broadcast %cst_52 : f32 to vector<8x128xf32>
    %262 = arith.mulf %261, %260 : vector<8x128xf32>
    %cst_53 = arith.constant 5.000000e-01 : f32
    %263 = vector.broadcast %cst_53 : f32 to vector<8x128xf32>
    %264 = arith.addf %262, %263 : vector<8x128xf32>
    %265 = vector.extract_strided_slice %259 {offsets = [8, 0], sizes = [8, 128], strides = [1, 1]} : vector<32x128xf32> to vector<8x128xf32>
    %cst_54 = arith.constant 5.000000e-01 : f32
    %266 = vector.broadcast %cst_54 : f32 to vector<8x128xf32>
    %267 = arith.mulf %266, %265 : vector<8x128xf32>
    %cst_55 = arith.constant 5.000000e-01 : f32
    %268 = vector.broadcast %cst_55 : f32 to vector<8x128xf32>
    %269 = arith.addf %267, %268 : vector<8x128xf32>
    %270 = vector.extract_strided_slice %259 {offsets = [16, 0], sizes = [8, 128], strides = [1, 1]} : vector<32x128xf32> to vector<8x128xf32>
    %271 = vector.extract_strided_slice %259 {offsets = [24, 0], sizes = [8, 128], strides = [1, 1]} : vector<32x128xf32> to vector<8x128xf32>
    %cst_56 = arith.constant 5.000000e-01 : f32
    %272 = vector.broadcast %cst_56 : f32 to vector<8x128xf32>
    %273 = arith.mulf %272, %271 : vector<8x128xf32>
    %cst_57 = arith.constant 5.000000e-01 : f32
    %274 = vector.broadcast %cst_57 : f32 to vector<8x128xf32>
    %275 = arith.addf %273, %274 : vector<8x128xf32>
    %276 = arith.mulf %269, %232 : vector<8x128xf32>
    %277 = arith.mulf %264, %270 : vector<8x128xf32>
    %278 = arith.addf %276, %277 : vector<8x128xf32>
    %279 = math.tanh %278 : vector<8x128xf32>
    %280 = arith.mulf %275, %279 : vector<8x128xf32>
    %c6 = arith.constant 6 : index
    %c0_58 = arith.constant 0 : index
    %281 = vector.load %arg1[%c6, %c0_58] : memref<8x128xf32, #tpu.memory_space<vmem>>, vector<1x128xf32>
    %282 = vector.broadcast %281 : vector<1x128xf32> to vector<32x128xf32>
    %283 = arith.mulf %2, %282 : vector<32x128xf32>
    %284 = arith.addf %283, %5 : vector<32x128xf32>
    %285 = vector.extract_strided_slice %280 {offsets = [0, 0], sizes = [1, 128], strides = [1, 1]} : vector<8x128xf32> to vector<1x128xf32>
    %286 = vector.broadcast %285 : vector<1x128xf32> to vector<32x128xf32>
    %287 = arith.mulf %8, %286 : vector<32x128xf32>
    %288 = arith.addf %284, %287 : vector<32x128xf32>
    %289 = vector.extract_strided_slice %280 {offsets = [1, 0], sizes = [1, 128], strides = [1, 1]} : vector<8x128xf32> to vector<1x128xf32>
    %290 = vector.broadcast %289 : vector<1x128xf32> to vector<32x128xf32>
    %291 = arith.mulf %11, %290 : vector<32x128xf32>
    %292 = arith.addf %288, %291 : vector<32x128xf32>
    %293 = vector.extract_strided_slice %280 {offsets = [2, 0], sizes = [1, 128], strides = [1, 1]} : vector<8x128xf32> to vector<1x128xf32>
    %294 = vector.broadcast %293 : vector<1x128xf32> to vector<32x128xf32>
    %295 = arith.mulf %14, %294 : vector<32x128xf32>
    %296 = arith.addf %292, %295 : vector<32x128xf32>
    %297 = vector.extract_strided_slice %280 {offsets = [3, 0], sizes = [1, 128], strides = [1, 1]} : vector<8x128xf32> to vector<1x128xf32>
    %298 = vector.broadcast %297 : vector<1x128xf32> to vector<32x128xf32>
    %299 = arith.mulf %17, %298 : vector<32x128xf32>
    %300 = arith.addf %296, %299 : vector<32x128xf32>
    %301 = vector.extract_strided_slice %280 {offsets = [4, 0], sizes = [1, 128], strides = [1, 1]} : vector<8x128xf32> to vector<1x128xf32>
    %302 = vector.broadcast %301 : vector<1x128xf32> to vector<32x128xf32>
    %303 = arith.mulf %20, %302 : vector<32x128xf32>
    %304 = arith.addf %300, %303 : vector<32x128xf32>
    %305 = math.tanh %304 : vector<32x128xf32>
    %306 = vector.extract_strided_slice %305 {offsets = [0, 0], sizes = [8, 128], strides = [1, 1]} : vector<32x128xf32> to vector<8x128xf32>
    %cst_59 = arith.constant 5.000000e-01 : f32
    %307 = vector.broadcast %cst_59 : f32 to vector<8x128xf32>
    %308 = arith.mulf %307, %306 : vector<8x128xf32>
    %cst_60 = arith.constant 5.000000e-01 : f32
    %309 = vector.broadcast %cst_60 : f32 to vector<8x128xf32>
    %310 = arith.addf %308, %309 : vector<8x128xf32>
    %311 = vector.extract_strided_slice %305 {offsets = [8, 0], sizes = [8, 128], strides = [1, 1]} : vector<32x128xf32> to vector<8x128xf32>
    %cst_61 = arith.constant 5.000000e-01 : f32
    %312 = vector.broadcast %cst_61 : f32 to vector<8x128xf32>
    %313 = arith.mulf %312, %311 : vector<8x128xf32>
    %cst_62 = arith.constant 5.000000e-01 : f32
    %314 = vector.broadcast %cst_62 : f32 to vector<8x128xf32>
    %315 = arith.addf %313, %314 : vector<8x128xf32>
    %316 = vector.extract_strided_slice %305 {offsets = [16, 0], sizes = [8, 128], strides = [1, 1]} : vector<32x128xf32> to vector<8x128xf32>
    %317 = vector.extract_strided_slice %305 {offsets = [24, 0], sizes = [8, 128], strides = [1, 1]} : vector<32x128xf32> to vector<8x128xf32>
    %cst_63 = arith.constant 5.000000e-01 : f32
    %318 = vector.broadcast %cst_63 : f32 to vector<8x128xf32>
    %319 = arith.mulf %318, %317 : vector<8x128xf32>
    %cst_64 = arith.constant 5.000000e-01 : f32
    %320 = vector.broadcast %cst_64 : f32 to vector<8x128xf32>
    %321 = arith.addf %319, %320 : vector<8x128xf32>
    %322 = arith.mulf %315, %278 : vector<8x128xf32>
    %323 = arith.mulf %310, %316 : vector<8x128xf32>
    %324 = arith.addf %322, %323 : vector<8x128xf32>
    %325 = math.tanh %324 : vector<8x128xf32>
    %326 = arith.mulf %321, %325 : vector<8x128xf32>
    %c7 = arith.constant 7 : index
    %c0_65 = arith.constant 0 : index
    %327 = vector.load %arg1[%c7, %c0_65] : memref<8x128xf32, #tpu.memory_space<vmem>>, vector<1x128xf32>
    %328 = vector.broadcast %327 : vector<1x128xf32> to vector<32x128xf32>
    %329 = arith.mulf %2, %328 : vector<32x128xf32>
    %330 = arith.addf %329, %5 : vector<32x128xf32>
    %331 = vector.extract_strided_slice %326 {offsets = [0, 0], sizes = [1, 128], strides = [1, 1]} : vector<8x128xf32> to vector<1x128xf32>
    %332 = vector.broadcast %331 : vector<1x128xf32> to vector<32x128xf32>
    %333 = arith.mulf %8, %332 : vector<32x128xf32>
    %334 = arith.addf %330, %333 : vector<32x128xf32>
    %335 = vector.extract_strided_slice %326 {offsets = [1, 0], sizes = [1, 128], strides = [1, 1]} : vector<8x128xf32> to vector<1x128xf32>
    %336 = vector.broadcast %335 : vector<1x128xf32> to vector<32x128xf32>
    %337 = arith.mulf %11, %336 : vector<32x128xf32>
    %338 = arith.addf %334, %337 : vector<32x128xf32>
    %339 = vector.extract_strided_slice %326 {offsets = [2, 0], sizes = [1, 128], strides = [1, 1]} : vector<8x128xf32> to vector<1x128xf32>
    %340 = vector.broadcast %339 : vector<1x128xf32> to vector<32x128xf32>
    %341 = arith.mulf %14, %340 : vector<32x128xf32>
    %342 = arith.addf %338, %341 : vector<32x128xf32>
    %343 = vector.extract_strided_slice %326 {offsets = [3, 0], sizes = [1, 128], strides = [1, 1]} : vector<8x128xf32> to vector<1x128xf32>
    %344 = vector.broadcast %343 : vector<1x128xf32> to vector<32x128xf32>
    %345 = arith.mulf %17, %344 : vector<32x128xf32>
    %346 = arith.addf %342, %345 : vector<32x128xf32>
    %347 = vector.extract_strided_slice %326 {offsets = [4, 0], sizes = [1, 128], strides = [1, 1]} : vector<8x128xf32> to vector<1x128xf32>
    %348 = vector.broadcast %347 : vector<1x128xf32> to vector<32x128xf32>
    %349 = arith.mulf %20, %348 : vector<32x128xf32>
    %350 = arith.addf %346, %349 : vector<32x128xf32>
    %351 = math.tanh %350 : vector<32x128xf32>
    %352 = vector.extract_strided_slice %351 {offsets = [0, 0], sizes = [8, 128], strides = [1, 1]} : vector<32x128xf32> to vector<8x128xf32>
    %cst_66 = arith.constant 5.000000e-01 : f32
    %353 = vector.broadcast %cst_66 : f32 to vector<8x128xf32>
    %354 = arith.mulf %353, %352 : vector<8x128xf32>
    %cst_67 = arith.constant 5.000000e-01 : f32
    %355 = vector.broadcast %cst_67 : f32 to vector<8x128xf32>
    %356 = arith.addf %354, %355 : vector<8x128xf32>
    %357 = vector.extract_strided_slice %351 {offsets = [8, 0], sizes = [8, 128], strides = [1, 1]} : vector<32x128xf32> to vector<8x128xf32>
    %cst_68 = arith.constant 5.000000e-01 : f32
    %358 = vector.broadcast %cst_68 : f32 to vector<8x128xf32>
    %359 = arith.mulf %358, %357 : vector<8x128xf32>
    %cst_69 = arith.constant 5.000000e-01 : f32
    %360 = vector.broadcast %cst_69 : f32 to vector<8x128xf32>
    %361 = arith.addf %359, %360 : vector<8x128xf32>
    %362 = vector.extract_strided_slice %351 {offsets = [16, 0], sizes = [8, 128], strides = [1, 1]} : vector<32x128xf32> to vector<8x128xf32>
    %363 = vector.extract_strided_slice %351 {offsets = [24, 0], sizes = [8, 128], strides = [1, 1]} : vector<32x128xf32> to vector<8x128xf32>
    %cst_70 = arith.constant 5.000000e-01 : f32
    %364 = vector.broadcast %cst_70 : f32 to vector<8x128xf32>
    %365 = arith.mulf %364, %363 : vector<8x128xf32>
    %cst_71 = arith.constant 5.000000e-01 : f32
    %366 = vector.broadcast %cst_71 : f32 to vector<8x128xf32>
    %367 = arith.addf %365, %366 : vector<8x128xf32>
    %368 = arith.mulf %361, %324 : vector<8x128xf32>
    %369 = arith.mulf %356, %362 : vector<8x128xf32>
    %370 = arith.addf %368, %369 : vector<8x128xf32>
    %371 = math.tanh %370 : vector<8x128xf32>
    %372 = arith.mulf %367, %371 : vector<8x128xf32>
    %cst_72 = arith.constant 0.000000e+00 : f32
    %373 = vector.broadcast %cst_72 : f32 to vector<8x128xf32>
    %374 = arith.maximumf %372, %373 : vector<8x128xf32>
    %375 = arith.mulf %374, %23 : vector<8x128xf32>
    %cst_73 = arith.constant dense<0.000000e+00> : vector<128xf32>
    %376 = vector.multi_reduction <add>, %375, %cst_73 [0] : vector<8x128xf32> to vector<128xf32>
    %377 = vector.shape_cast %376 : vector<128xf32> to vector<1x128xf32>
    %c0_74 = arith.constant 0 : index
    %c0_75 = arith.constant 0 : index
    %378 = vector.load %arg6[%c0_74, %c0_75] : memref<1x1xf32, #tpu.memory_space<vmem>>, vector<1x1xf32>
    %379 = vector.broadcast %378 : vector<1x1xf32> to vector<1x128xf32>
    %380 = arith.addf %377, %379 : vector<1x128xf32>
    %c0_76 = arith.constant 0 : index
    %c0_77 = arith.constant 0 : index
    %381 = vector.load %arg7[%c0_76, %c0_77] : memref<1x128xf32, #tpu.memory_space<vmem>>, vector<1x128xf32>
    tpu.vector_store %arg7[%c0_76, %c0_77], %380 {strides = array<i32>} : memref<1x128xf32, #tpu.memory_space<vmem>>, vector<1x128xf32>,
    return
  }
  func.func @transform_0(%arg0: i32) -> (i32, i32) {
    %c0_i32 = arith.constant 0 : i32
    %c0_i32_0 = arith.constant 0 : i32
    return %c0_i32, %arg0 : i32, i32
  }
  func.func @transform_1(%arg0: i32) -> (i32, i32) {
    %c0_i32 = arith.constant 0 : i32
    %c0_i32_0 = arith.constant 0 : i32
    %c0_i32_1 = arith.constant 0 : i32
    return %c0_i32, %c0_i32_0 : i32, i32
  }
  func.func @transform_2(%arg0: i32) -> (i32, i32) {
    %c0_i32 = arith.constant 0 : i32
    %c0_i32_0 = arith.constant 0 : i32
    %c0_i32_1 = arith.constant 0 : i32
    return %c0_i32, %c0_i32_0 : i32, i32
  }
  func.func @transform_3(%arg0: i32) -> (i32, i32) {
    %c0_i32 = arith.constant 0 : i32
    %c0_i32_0 = arith.constant 0 : i32
    %c0_i32_1 = arith.constant 0 : i32
    return %c0_i32, %c0_i32_0 : i32, i32
  }
  func.func @transform_4(%arg0: i32) -> (i32, i32) {
    %c0_i32 = arith.constant 0 : i32
    %c0_i32_0 = arith.constant 0 : i32
    %c0_i32_1 = arith.constant 0 : i32
    return %c0_i32, %c0_i32_0 : i32, i32
  }
  func.func @transform_5(%arg0: i32) -> (i32, i32) {
    %c0_i32 = arith.constant 0 : i32
    %c0_i32_0 = arith.constant 0 : i32
    %c0_i32_1 = arith.constant 0 : i32
    return %c0_i32, %c0_i32_0 : i32, i32
  }
  func.func @transform_6(%arg0: i32) -> (i32, i32) {
    %c0_i32 = arith.constant 0 : i32
    %c0_i32_0 = arith.constant 0 : i32
    return %c0_i32, %arg0 : i32, i32
  }
}

</mosaic_0001>

<bundles_post_ra>
// kernel: tpu_custom_call.1
= control target key start
LH: loop header
LB: loop body
LE: loop exit
PB: predicated region body
PF: predicated region fallthrough
CT: control target
= control target key end

     0   :  { %s1516_s0 = inlined_call_operand.vmem [shape: f32[8,128], index: 0, kind: input, shape index: {}]   ;;  %s1517_s1 = inlined_call_operand.vmem [shape: f32[32,1], index: 1, kind: input, shape index: {}]   ;;  %s1518_s2 = inlined_call_operand.vmem [shape: f32[32,5], index: 2, kind: input, shape index: {}]   ;;  %s1519_s3 = inlined_call_operand.vmem [shape: f32[32,1], index: 3, kind: input, shape index: {}]   ;;  %s1520_s4 = inlined_call_operand.vmem [shape: f32[8,1], index: 4, kind: input, shape index: {}]   ;;  %s1521_s5 = inlined_call_operand.<no memory space> [shape: f32[1,1], index: 5, kind: input, shape index: {}]   ;;  %s1522_s6 = inlined_call_operand.hbm [shape: f32[1,128], index: 6, kind: output, shape index: {}]  }
   0x1   :  { %v11_v0 = vstv %s1521_s5 }
   0x2   :  { %12 = vst [vmem:[#allocation2] sm:$0x1] %v11_v0 }
   0x3   :  { %v50_v1 = vld [vmem:[%s1519_s3] sm:$0xff]  ;;  %v985_v3 = vmov 0   ;;  %v51_v4 = vld [vmem:[%s1519_s3 + $0x8] sm:$0xff] }
   0x4   :  { %v26_v2 = vld [vmem:[%s1517_s1] sm:$0xff]  ;;  %861 = vset.pattern.permute.xlu1 %v985_v3  ;;  %860 = vset.pattern.permute.xlu0 %v985_v3  ;;  %v27_v5 = vld [vmem:[%s1517_s1 + $0x8] sm:$0xff] }
   0x5   :  { %56 = vperm.xlu1 %861, %v50_v1   ;;  %32 = vperm.xlu0 %860, %v26_v2  }
   0x9   :  { %61 = vperm.xlu1 %861, %v51_v4   ;;  %37 = vperm.xlu0 %860, %v27_v5  }
   0xa   :  { %13 = vsyncpa [#allocation4], 0  ;;  %v52_v6 = vld [vmem:[%s1519_s3 + $0x10] sm:$0xff]  ;;  %v53_v8 = vld [vmem:[%s1519_s3 + $0x18] sm:$0xff]  ;;  %v986_v12 = vmov 1   ;;  %v987_v14 = vmov 2  }
   0xb   :  { %v28_v7 = vld [vmem:[%s1517_s1 + $0x10] sm:$0xff]  ;;  %v29_v9 = vld [vmem:[%s1517_s1 + $0x18] sm:$0xff]  ;;  %v75_v10 = vld [vmem:[%s1518_s2 + $0x8] sm:$0xff]  ;;  %v988_v15 = vmov 3   ;;  %v989_v16 = vmov 4  }
   0xc   :  { %v74_v11 = vld [vmem:[%s1518_s2] sm:$0xff]  ;;  %v76_v13 = vld [vmem:[%s1518_s2 + $0x10] sm:$0xff]  ;;  %v77_v17 = vld [vmem:[%s1518_s2 + $0x18] sm:$0xff] }
   0xd   :  { %66 = vperm.xlu1 %861, %v52_v6   ;;  %42 = vperm.xlu0 %860, %v28_v7   ;;  %v846_v18 = vld [vmem:[%s1516_s0] ss:$0 sm:$0xff]  ;;  %v848_v19 = vld [vmem:[%s1516_s0 + $0x2] ss:$0 sm:$0xff]  ;;  %v849_v20 = vld [vmem:[%s1516_s0 + $0x3] ss:$0 sm:$0xff] }
   0xe   :  { %v850_v21 = vld [vmem:[%s1516_s0 + $0x4] ss:$0 sm:$0xff]  ;;  %v851_v22 = vld [vmem:[%s1516_s0 + $0x5] ss:$0 sm:$0xff]  ;;  %v852_v23 = vld [vmem:[%s1516_s0 + $0x6] ss:$0 sm:$0xff] }
   0xf   :  { %v853_v24 = vld [vmem:[%s1516_s0 + $0x7] ss:$0 sm:$0xff] }
  0x11   :  { %71 = vperm.xlu1 %861, %v53_v8   ;;  %47 = vperm.xlu0 %860, %v29_v9  }
  0x15   :  { %85 = vperm.xlu1 %861, %v75_v10   ;;  %80 = vperm.xlu0 %860, %v74_v11  }
  0x19   :  { %863 = vset.pattern.permute.xlu1 %v986_v12  ;;  %862 = vset.pattern.permute.xlu0 %v986_v12 }
  0x1a   :  { %103 = vperm.xlu1 %863, %v75_v10   ;;  %99 = vperm.xlu0 %862, %v74_v11  }
  0x1e   :  { %864 = vset.pattern.permute.xlu1 %v985_v3  ;;  %865 = vset.pattern.permute.xlu0 %v987_v14 }
  0x1f   :  { %90 = vperm.xlu1 %864, %v76_v13   ;;  %115 = vperm.xlu0 %865, %v74_v11  }
  0x23   :  { %866 = vset.pattern.permute.xlu1 %v987_v14  ;;  %868 = vset.pattern.permute.xlu0 %v988_v15 }
  0x24   :  { %119 = vperm.xlu1 %866, %v75_v10   ;;  %131 = vperm.xlu0 %868, %v74_v11  }
  0x28   :  { %867 = vset.pattern.permute.xlu1 %v986_v12  ;;  %871 = vset.pattern.permute.xlu0 %v989_v16 }
  0x29   :  { %107 = vperm.xlu1 %867, %v76_v13   ;;  %147 = vperm.xlu0 %871, %v74_v11  }
  0x2d   :  { %869 = vset.pattern.permute.xlu1 %v988_v15  ;;  %155 = vperm.xlu0 %871, %v76_v13  }
  0x2e   :  { %135 = vperm.xlu1 %869, %v75_v10  }
  0x31   :  { %875 = vset.pattern.permute.xlu0 %v986_v12 }
  0x32   :  { %870 = vset.pattern.permute.xlu1 %v987_v14  ;;  %111 = vperm.xlu0 %875, %v77_v17  }
  0x33   :  { %123 = vperm.xlu1 %870, %v76_v13  }
  0x36   :  { %878 = vset.pattern.permute.xlu0 %v989_v16 }
  0x37   :  { %872 = vset.pattern.permute.xlu1 %v989_v16  ;;  %159 = vperm.xlu0 %878, %v77_v17  }
  0x38   :  { %151 = vperm.xlu1 %872, %v75_v10  }
  0x3b   :  { %880 = vset.pattern.permute.xlu0 %v985_v3 }
  0x3c   :  { %873 = vset.pattern.permute.xlu1 %v988_v15 }
  0x3d   :  { %139 = vperm.xlu1 %873, %v76_v13  }
  0x41   :  { %874 = vset.pattern.permute.xlu1 %v985_v3 }
  0x42   :  { %95 = vperm.xlu1 %874, %v77_v17  }
  0x46   :  { %876 = vset.pattern.permute.xlu1 %v987_v14 }
  0x47   :  { %127 = vperm.xlu1 %876, %v77_v17  }
  0x4b   :  { %877 = vset.pattern.permute.xlu1 %v988_v15 }
  0x4c   :  { %143 = vperm.xlu1 %877, %v77_v17  }
  0x50   :  { %879 = vset.pattern.permute.xlu1 %v985_v3 }
  0x84   :  { %v1092_v25 = vpop.permute.xlu1 %56  ;;  %v1094_v26 = vpop.permute.xlu0 %32 }
  0x85   :  { %v173_v27 = vmul.f32 %v846_v18, %v1094_v26  ;;  %v289_v28 = vmul.f32 %v848_v19, %v1094_v26  ;;  %v377_v29 = vmul.f32 %v849_v20, %v1094_v26  ;;  %v465_v30 = vmul.f32 %v850_v21, %v1094_v26 }
  0x86   :  { %v553_v31 = vmul.f32 %v851_v22, %v1094_v26  ;;  %v641_v32 = vmul.f32 %v852_v23, %v1094_v26  ;;  %v729_v33 = vmul.f32 %v853_v24, %v1094_v26 }
  0x87   :  { %v177_v34 = vadd.f32 %v173_v27, %v1092_v25  ;;  %v1105_v35 = vadd.f32 %v289_v28, %v1092_v25  ;;  %v1108_v36 = vadd.f32 %v377_v29, %v1092_v25  ;;  %v1111_v37 = vadd.f32 %v465_v30, %v1092_v25 }
  0x88   :  { %v1114_v38 = vadd.f32 %v553_v31, %v1092_v25  ;;  %v1117_v39 = vadd.f32 %v641_v32, %v1092_v25  ;;  %v1120_v40 = vadd.f32 %v729_v33, %v1092_v25  ;;  %v1122_v41 = vpop.permute.xlu1 %61  ;;  %v1124_v42 = vpop.permute.xlu0 %37 }
  0x89   :  { %881 = vtanh.f32 %v177_v34  ;;  %v174_v43 = vmul.f32 %v846_v18, %v1124_v42  ;;  %v290_v44 = vmul.f32 %v848_v19, %v1124_v42  ;;  %v378_v45 = vmul.f32 %v849_v20, %v1124_v42 }
  0x8a   :  { %1523 = vst [vmem:[#allocation6_spill] sm:$0xff] %v1117_v39  ;;  %1524 = vst [vmem:[#allocation7_spill] sm:$0xff] %v1120_v40  ;;  %v466_v46 = vmul.f32 %v850_v21, %v1124_v42  ;;  %v554_v47 = vmul.f32 %v851_v22, %v1124_v42  ;;  %v642_v48 = vmul.f32 %v852_v23, %v1124_v42 }
  0x8b   :  { %v178_v49 = vadd.f32 %v174_v43, %v1122_v41  ;;  %v1134_v50 = vadd.f32 %v290_v44, %v1122_v41  ;;  %v730_v51 = vmul.f32 %v853_v24, %v1124_v42  ;;  %v1138_v52 = vadd.f32 %v378_v45, %v1122_v41 }
  0x8c   :  { %v1141_v53 = vadd.f32 %v466_v46, %v1122_v41  ;;  %v1144_v54 = vadd.f32 %v554_v47, %v1122_v41  ;;  %v1147_v55 = vadd.f32 %v642_v48, %v1122_v41  ;;  %v1149_v56 = vpop.permute.xlu1 %66  ;;  %v1151_v57 = vpop.permute.xlu0 %42 }
  0x8d   :  { %883 = vtanh.f32 %v178_v49  ;;  %v1154_v58 = vadd.f32 %v730_v51, %v1122_v41  ;;  %v175_v59 = vmul.f32 %v846_v18, %v1151_v57  ;;  %v291_v60 = vmul.f32 %v848_v19, %v1151_v57 }
  0x8e   :  { %1525 = vst [vmem:[#allocation8_spill] sm:$0xff] %v1147_v55  ;;  %v379_v61 = vmul.f32 %v849_v20, %v1151_v57  ;;  %v467_v62 = vmul.f32 %v850_v21, %v1151_v57  ;;  %v555_v63 = vmul.f32 %v851_v22, %v1151_v57  ;;  %v643_v1 = vmul.f32 %v852_v23, %v1151_v57 }
  0x8f   :  { %1526 = vst [vmem:[#allocation9_spill] sm:$0xff] %v1154_v58  ;;  %v179_v0 = vadd.f32 %v175_v59, %v1149_v56  ;;  %v731_v2 = vmul.f32 %v853_v24, %v1151_v57  ;;  %v1165_v3 = vadd.f32 %v291_v60, %v1149_v56  ;;  %v209_v49 = vlaneseq }
  0x90   :  { %v1168_v4 = vadd.f32 %v379_v61, %v1149_v56  ;;  %v1171_v5 = vadd.f32 %v467_v62, %v1149_v56  ;;  %v1174_v6 = vadd.f32 %v555_v63, %v1149_v56  ;;  %v1176_v7 = vpop.permute.xlu1 %71  ;;  %v1178_v8 = vpop.permute.xlu0 %47  ;;  %v1181_v9 = vadd.f32 %v643_v1, %v1149_v56  ;;  %v847_v63 = vld [vmem:[%s1516_s0 + $0x1] ss:$0 sm:$0xff] }
  0x91   :  { %885 = vtanh.f32 %v179_v0  ;;  %v1184_v10 = vadd.f32 %v731_v2, %v1149_v56  ;;  %v176_v11 = vmul.f32 %v846_v18, %v1178_v8  ;;  %v292_v12 = vmul.f32 %v848_v19, %v1178_v8 }
  0x92   :  { %1527 = vst [vmem:[#allocation10_spill] sm:$0xff] %v1174_v6  ;;  %1528 = vst [vmem:[#allocation11_spill] sm:$0xff] %v1181_v9  ;;  %v380_v13 = vmul.f32 %v849_v20, %v1178_v8  ;;  %v468_v14 = vmul.f32 %v850_v21, %v1178_v8  ;;  %v556_v16 = vmul.f32 %v851_v22, %v1178_v8  ;;  %v210_v62 = vshrl.u32 %v209_v49, 7 }
  0x93   :  { %1529 = vst [vmem:[#allocation12_spill] sm:$0xff] %v1184_v10  ;;  %v882_v15 = vpop.eup %881  ;;  %v644_v17 = vmul.f32 %v852_v23, %v1178_v8  ;;  %v732_v27 = vmul.f32 %v853_v24, %v1178_v8  ;;  %v180_v28 = vadd.f32 %v176_v11, %v1176_v7  ;;  %v1195_v29 = vadd.f32 %v292_v12, %v1176_v7 }
  0x94   :  { %v1198_v18 = vadd.f32 %v380_v13, %v1176_v7  ;;  %v1201_v19 = vadd.f32 %v468_v14, %v1176_v7  ;;  %v1203_v20 = vpop.permute.xlu1 %85  ;;  %v1206_v21 = vadd.f32 %v556_v16, %v1176_v7  ;;  %v185_v23 = vmul.f32 0.5, %v882_v15  ;;  %v1221_v48 = vpop.permute.xlu0 %80 }
  0x95   :  { %v1209_v22 = vadd.f32 %v644_v17, %v1176_v7  ;;  %v1212_v24 = vadd.f32 %v732_v27, %v1176_v7  ;;  %887 = vtanh.f32 %v180_v28  ;;  %v1232_v2 = vsub.s32 0, %v210_v62 }
  0x96   :  { %1530 = vst [vmem:[#allocation13_spill] sm:$0xff] %v1206_v21  ;;  %v186_v33 = vadd.f32 0.5, %v185_v23  ;;  %v1234_v11 = vsub.s32 1, %v210_v62  ;;  %v201_v13 = vmul.f32 %v847_v63, %v1094_v26  ;;  %v202_v15 = vmul.f32 %v847_v63, %v1124_v42 }
  0x97   :  { %1531 = vst [vmem:[#allocation14_spill] sm:$0xff] %v1209_v22  ;;  %1532 = vst [vmem:[#allocation15_spill] sm:$0xff] %v1212_v24  ;;  %v884_v30 = vpop.eup %883  ;;  %v1240_v17 = vsub.s32 2, %v210_v62  ;;  %v1242_v27 = vsub.s32 3, %v210_v62  ;;  %v1250_v26 = vsub.s32 4, %v210_v62 }
  0x98   :  { %v187_v31 = vmul.f32 0.5, %v884_v30 }
  0x99   :  { %v1214_v32 = vpop.permute.xlu1 %103  ;;  %v1225_v60 = vpop.permute.xlu0 %99 }
  0x9a   :  { %v188_v34 = vadd.f32 0.5, %v187_v31  ;;  %v203_v31 = vmul.f32 %v847_v63, %v1151_v57 }
  0x9b   :  { %v886_v43 = vpop.eup %885 }
  0x9c   :  { %v191_v44 = vmul.f32 0.0, %v188_v34  ;;  %v192_v45 = vmul.f32 %v886_v43, %v186_v33  ;;  %v205_v33 = vadd.f32 %v201_v13, %v1092_v25  ;;  %v206_v34 = vadd.f32 %v202_v15, %v1122_v41 }
  0x9d   :  { %v207_v41 = vadd.f32 %v203_v31, %v1149_v56 }
  0x9e   :  { %v1216_v46 = vadd.f32 %v192_v45, %v191_v44  ;;  %v1218_v47 = vpop.permute.xlu1 %90  ;;  %v1237_v14 = vpop.permute.xlu0 %115 }
  0x9f   :  { %v888_v51 = vpop.eup %887 }
  0xa0   :  { %889 = vtanh.f32 %v1216_v46  ;;  %v189_v61 = vmul.f32 0.5, %v888_v51 }
  0xa2   :  { %v190_v1 = vadd.f32 0.5, %v189_v61 }
  0xa3   :  { %v1223_v59 = vpop.permute.xlu1 %119  ;;  %v1258_v51 = vpop.permute.xlu0 %131 }
  0xa8   :  { %v1230_v0 = vpop.permute.xlu1 %107  ;;  %v1270_v40 = vpop.permute.xlu0 %147 }
  0xaa   :  { %v890_v12 = vpop.eup %889 }
  0xab   :  { %v195_v16 = vmul.f32 %v890_v12, %v190_v1 }
  0xad   :  { %v212_v28 = vrot.slane %v195_v16, %v1232_v2  ;;  %v224_v23 = vrot.slane %v195_v16, %v1234_v11  ;;  %v1246_v30 = vpop.permute.xlu1 %135  ;;  %v236_v44 = vrot.slane %v195_v16, %v1240_v17  ;;  %v248_v49 = vrot.slane %v195_v16, %v1242_v27 }
  0xae   :  { %v260_v1 = vrot.slane %v195_v16, %v1250_v26 }
  0xaf   :  { %v214_v42 = vmul.f32 %v212_v28, %v1203_v20  ;;  %v213_v43 = vmul.f32 %v212_v28, %v1221_v48  ;;  %v226_v45 = vmul.f32 %v224_v23, %v1214_v32  ;;  %v225_v25 = vmul.f32 %v224_v23, %v1225_v60 }
  0xb0   :  { %v215_v62 = vmul.f32 %v212_v28, %v1218_v47  ;;  %v237_v24 = vmul.f32 %v236_v44, %v1237_v14  ;;  %v238_v10 = vmul.f32 %v236_v44, %v1223_v59  ;;  %v249_v58 = vmul.f32 %v248_v49, %v1258_v51 }
  0xb1   :  { %v218_v61 = vadd.f32 %v214_v42, %v206_v34  ;;  %v217_v57 = vadd.f32 %v213_v43, %v205_v33  ;;  %v250_v43 = vmul.f32 %v248_v49, %v1246_v30  ;;  %v227_v16 = vmul.f32 %v224_v23, %v1230_v0 }
  0xb2   :  { %v1264_v12 = vpop.permute.xlu1 %123  ;;  %v219_v34 = vadd.f32 %v215_v62, %v207_v41  ;;  %v261_v31 = vmul.f32 %v260_v1, %v1270_v40 }
  0xb3   :  { %v230_v13 = vadd.f32 %v226_v45, %v218_v61  ;;  %v229_v15 = vadd.f32 %v225_v25, %v217_v57  ;;  %v239_v62 = vmul.f32 %v236_v44, %v1264_v12 }
  0xb4   :  { %v231_v25 = vadd.f32 %v227_v16, %v219_v34 }
  0xb5   :  { %v241_v33 = vadd.f32 %v237_v24, %v229_v15  ;;  %v242_v42 = vadd.f32 %v238_v10, %v230_v13  ;;  %v1278_v10 = vpop.permute.xlu0 %155  ;;  %v204_v15 = vmul.f32 %v847_v63, %v1178_v8 }
  0xb7   :  { %v253_v56 = vadd.f32 %v249_v58, %v241_v33  ;;  %v254_v45 = vadd.f32 %v250_v43, %v242_v42  ;;  %v1274_v61 = vpop.permute.xlu1 %151  ;;  %v243_v58 = vadd.f32 %v239_v62, %v231_v25  ;;  %v263_v33 = vmul.f32 %v260_v1, %v1278_v10 }
  0xb8   :  { %v262_v57 = vmul.f32 %v260_v1, %v1274_v61 }
  0xb9   :  { %v265_v55 = vadd.f32 %v261_v31, %v253_v56  ;;  %v208_v56 = vadd.f32 %v204_v15, %v1176_v7  ;;  %v1289_v16 = vpop.permute.xlu0 %111 }
  0xba   :  { %v266_v24 = vadd.f32 %v262_v57, %v254_v45  ;;  %v228_v25 = vmul.f32 %v224_v23, %v1289_v16 }
  0xbb   :  { %891 = vtanh.f32 %v265_v55 }
  0xbc   :  { %893 = vtanh.f32 %v266_v24  ;;  %v1280_v41 = vpop.permute.xlu1 %139 }
  0xbd   :  { %v251_v13 = vmul.f32 %v248_v49, %v1280_v41 }
  0xbf   :  { %v255_v42 = vadd.f32 %v251_v13, %v243_v58  ;;  %v1295_v13 = vpop.permute.xlu0 %159 }
  0xc1   :  { %v267_v43 = vadd.f32 %v263_v33, %v255_v42  ;;  %v1285_v34 = vpop.permute.xlu1 %95 }
  0xc2   :  { %v216_v55 = vmul.f32 %v212_v28, %v1285_v34 }
  0xc3   :  { %895 = vtanh.f32 %v267_v43 }
  0xc4   :  { %v220_v31 = vadd.f32 %v216_v55, %v208_v56  ;;  %v264_v56 = vmul.f32 %v260_v1, %v1295_v13 }
  0xc5   :  { %v892_v45 = vpop.eup %891 }
  0xc6   :  { %v894_v57 = vpop.eup %893  ;;  %v1292_v62 = vpop.permute.xlu1 %127  ;;  %v232_v8 = vadd.f32 %v228_v25, %v220_v31  ;;  %v273_v24 = vmul.f32 0.5, %v892_v45 }
  0xc7   :  { %v240_v63 = vmul.f32 %v236_v44, %v1292_v62  ;;  %v275_v58 = vmul.f32 0.5, %v894_v57 }
  0xc8   :  { %v274_v42 = vadd.f32 0.5, %v273_v24 }
  0xc9   :  { %v244_v28 = vadd.f32 %v240_v63, %v232_v8  ;;  %v276_v43 = vadd.f32 0.5, %v275_v58 }
  0xcb   :  { %v1297_v7 = vpop.permute.xlu1 %143  ;;  %v279_v31 = vmul.f32 %v276_v43, %v1216_v46 }
  0xcc   :  { %v252_v15 = vmul.f32 %v248_v49, %v1297_v7 }
  0xcd   :  { %v896_v33 = vpop.eup %895 }
  0xce   :  { %v256_v23 = vadd.f32 %v252_v15, %v244_v28  ;;  %v280_v55 = vmul.f32 %v896_v33, %v274_v42 }
  0xd0   :  { %v268_v39 = vadd.f32 %v264_v56, %v256_v23  ;;  %v1302_v44 = vadd.f32 %v280_v55, %v279_v31 }
  0xd2   :  { %897 = vtanh.f32 %v268_v39 }
  0xd3   :  { %899 = vtanh.f32 %v1302_v44 }
  0xdc   :  { %v898_v45 = vpop.eup %897 }
  0xdd   :  { %v277_v57 = vmul.f32 0.5, %v898_v45  ;;  %v900_v8 = vpop.eup %899 }
  0xdf   :  { %v278_v25 = vadd.f32 0.5, %v277_v57 }
  0xe1   :  { %v283_v49 = vmul.f32 %v900_v8, %v278_v25 }
  0xe3   :  { %v300_v63 = vrot.slane %v283_v49, %v1232_v2  ;;  %v312_v24 = vrot.slane %v283_v49, %v1234_v11  ;;  %v324_v1 = vrot.slane %v283_v49, %v1240_v17  ;;  %v336_v42 = vrot.slane %v283_v49, %v1242_v27 }
  0xe4   :  { %v348_v25 = vrot.slane %v283_v49, %v1250_v26 }
  0xe5   :  { %v301_v58 = vmul.f32 %v300_v63, %v1221_v48  ;;  %v302_v46 = vmul.f32 %v300_v63, %v1203_v20  ;;  %v303_v28 = vmul.f32 %v300_v63, %v1218_v47  ;;  %v304_v39 = vmul.f32 %v300_v63, %v1285_v34 }
  0xe6   :  { %v313_v15 = vmul.f32 %v312_v24, %v1225_v60  ;;  %v314_v33 = vmul.f32 %v312_v24, %v1214_v32  ;;  %v315_v55 = vmul.f32 %v312_v24, %v1230_v0  ;;  %v325_v45 = vmul.f32 %v324_v1, %v1237_v14 }
  0xe7   :  { %v305_v43 = vadd.f32 %v301_v58, %v1105_v35  ;;  %v306_v56 = vadd.f32 %v302_v46, %v1134_v50  ;;  %v307_v23 = vadd.f32 %v303_v28, %v1165_v3  ;;  %v308_v31 = vadd.f32 %v304_v39, %v1195_v29 }
  0xe8   :  { %v326_v57 = vmul.f32 %v324_v1, %v1223_v59  ;;  %v327_v9 = vmul.f32 %v324_v1, %v1264_v12  ;;  %v316_v35 = vmul.f32 %v312_v24, %v1289_v16  ;;  %v337_v50 = vmul.f32 %v336_v42, %v1258_v51 }
  0xe9   :  { %v317_v8 = vadd.f32 %v313_v15, %v305_v43  ;;  %v318_v63 = vadd.f32 %v314_v33, %v306_v56  ;;  %v319_v22 = vadd.f32 %v315_v55, %v307_v23  ;;  %v338_v3 = vmul.f32 %v336_v42, %v1246_v30 }
  0xea   :  { %v339_v28 = vmul.f32 %v336_v42, %v1280_v41  ;;  %v320_v39 = vadd.f32 %v316_v35, %v308_v31  ;;  %v349_v21 = vmul.f32 %v348_v25, %v1270_v40  ;;  %v350_v43 = vmul.f32 %v348_v25, %v1274_v61 }
  0xeb   :  { %v329_v58 = vadd.f32 %v325_v45, %v317_v8  ;;  %v330_v46 = vadd.f32 %v326_v57, %v318_v63  ;;  %v331_v29 = vadd.f32 %v327_v9, %v319_v22  ;;  %v328_v56 = vmul.f32 %v324_v1, %v1292_v62 }
  0xec   :  { %v351_v24 = vmul.f32 %v348_v25, %v1278_v10  ;;  %v340_v9 = vmul.f32 %v336_v42, %v1297_v7  ;;  %v352_v31 = vmul.f32 %v348_v25, %v1295_v13  ;;  %v820_v42 = vld [vmem:[#allocation2] sm:$0x1] }
  0xed   :  { %v341_v49 = vadd.f32 %v337_v50, %v329_v58  ;;  %v342_v15 = vadd.f32 %v338_v3, %v330_v46  ;;  %v343_v33 = vadd.f32 %v339_v28, %v331_v29  ;;  %v332_v6 = vadd.f32 %v328_v56, %v320_v39 }
  0xef   :  { %v353_v23 = vadd.f32 %v349_v21, %v341_v49  ;;  %v354_v55 = vadd.f32 %v350_v43, %v342_v15  ;;  %v355_v45 = vadd.f32 %v351_v24, %v343_v33  ;;  %v344_v22 = vadd.f32 %v340_v9, %v332_v6  ;;  %v162_v21 = vld [vmem:[%s1520_s4] sm:$0xff]  ;;  %s990_s4 = smov [#allocation3]  }
  0xf0   :  { %165 = vperm.xlu1 %879, %v162_v21   ;;  %s838_s11 = sshll.u32 %s990_s4, 4  ;;  %s839_s11 = int_to_ptr.vmem [resolvable:$true] %s838_s11 }
  0xf1   :  { %901 = vtanh.f32 %v353_v23  ;;  %v356_v57 = vadd.f32 %v352_v31, %v344_v22  ;;  %s961_s12 = scalar_lea.vmem %s839_s11, 16  ;;  %s965_s13 = scalar_lea.vmem %s839_s11, 32 }
  0xf2   :  { %903 = vtanh.f32 %v354_v55  ;;  %p962_p0 = scmp.ne.s32.totalorder %s839_s11, %s961_s12  ;;  %p966_p1 = scmp.lt.s32.totalorder %s839_s11, %s839_s11 }
  0xf3   :  { %905 = vtanh.f32 %v355_v45  ;;  %p967_p2 = scmp.lt.s32.totalorder %s965_s13, %s961_s12 }
  0xf4   :  { %907 = vtanh.f32 %v356_v57  ;;  %823 = vperm.xlu1 %879, %v820_v42  }
  0xf5   :  { %p968_p3 = por %p967_p2, %p966_p1 }
  0xf7   :  { %p969_p4 = pnand %p968_p3, %p962_p0 }
  0xfb   :  { %v902_v8 = vpop.eup %901 }
  0xfc   :  { %v904_v63 = vpop.eup %903  ;;  %v361_v35 = vmul.f32 0.5, %v902_v8 }
  0xfd   :  { %v363_v1 = vmul.f32 0.5, %v904_v63  ;;  %v906_v3 = vpop.eup %905 }
  0xfe   :  { %v362_v50 = vadd.f32 0.5, %v361_v35  ;;  %v908_v25 = vpop.eup %907 }
  0xff   :  { %v364_v58 = vadd.f32 0.5, %v363_v1  ;;  %v365_v28 = vmul.f32 0.5, %v908_v25 }
 0x100   :  { %v368_v46 = vmul.f32 %v906_v3, %v362_v50 }
 0x101   :  { %v367_v6 = vmul.f32 %v364_v58, %v1302_v44  ;;  %v366_v39 = vadd.f32 0.5, %v365_v28 }
 0x103   :  { %v1338_v29 = vadd.f32 %v368_v46, %v367_v6 }
 0x105   :  { %909 = vtanh.f32 %v1338_v29 }
 0x10f   :  { %v910_v49 = vpop.eup %909 }
 0x110   :  { %v371_v15 = vmul.f32 %v910_v49, %v366_v39 }
 0x112   :  { %v388_v33 = vrot.slane %v371_v15, %v1232_v2  ;;  %v400_v43 = vrot.slane %v371_v15, %v1234_v11  ;;  %v412_v56 = vrot.slane %v371_v15, %v1240_v17  ;;  %v424_v24 = vrot.slane %v371_v15, %v1242_v27 }
 0x113   :  { %v436_v44 = vrot.slane %v371_v15, %v1250_v26 }
 0x114   :  { %v389_v23 = vmul.f32 %v388_v33, %v1221_v48  ;;  %v390_v55 = vmul.f32 %v388_v33, %v1203_v20  ;;  %v391_v45 = vmul.f32 %v388_v33, %v1218_v47  ;;  %v392_v9 = vmul.f32 %v388_v33, %v1285_v34 }
 0x115   :  { %v401_v22 = vmul.f32 %v400_v43, %v1225_v60  ;;  %v402_v31 = vmul.f32 %v400_v43, %v1214_v32  ;;  %v403_v57 = vmul.f32 %v400_v43, %v1230_v0  ;;  %v404_v8 = vmul.f32 %v400_v43, %v1289_v16 }
 0x116   :  { %v393_v63 = vadd.f32 %v389_v23, %v1108_v36  ;;  %v394_v35 = vadd.f32 %v390_v55, %v1138_v52  ;;  %v395_v1 = vadd.f32 %v391_v45, %v1168_v4  ;;  %v396_v50 = vadd.f32 %v392_v9, %v1198_v18 }
 0x117   :  { %v413_v21 = vmul.f32 %v412_v56, %v1237_v14  ;;  %v414_v3 = vmul.f32 %v412_v56, %v1223_v59  ;;  %v415_v58 = vmul.f32 %v412_v56, %v1264_v12  ;;  %v416_v46 = vmul.f32 %v412_v56, %v1292_v62 }
 0x118   :  { %v405_v6 = vadd.f32 %v401_v22, %v393_v63  ;;  %v406_v42 = vadd.f32 %v402_v31, %v394_v35  ;;  %v407_v25 = vadd.f32 %v403_v57, %v395_v1  ;;  %v408_v28 = vadd.f32 %v404_v8, %v396_v50 }
 0x119   :  { %v425_v36 = vmul.f32 %v424_v24, %v1258_v51  ;;  %v426_v52 = vmul.f32 %v424_v24, %v1246_v30  ;;  %v427_v4 = vmul.f32 %v424_v24, %v1280_v41  ;;  %v428_v18 = vmul.f32 %v424_v24, %v1297_v7 }
 0x11a   :  { %v417_v39 = vadd.f32 %v413_v21, %v405_v6  ;;  %v418_v49 = vadd.f32 %v414_v3, %v406_v42  ;;  %v419_v15 = vadd.f32 %v415_v58, %v407_v25  ;;  %v420_v33 = vadd.f32 %v416_v46, %v408_v28 }
 0x11b   :  { %v437_v43 = vmul.f32 %v436_v44, %v1270_v40  ;;  %v438_v56 = vmul.f32 %v436_v44, %v1274_v61  ;;  %v439_v23 = vmul.f32 %v436_v44, %v1278_v10  ;;  %v440_v55 = vmul.f32 %v436_v44, %v1295_v13 }
 0x11c   :  { %v429_v45 = vadd.f32 %v425_v36, %v417_v39  ;;  %v430_v9 = vadd.f32 %v426_v52, %v418_v49  ;;  %v431_v22 = vadd.f32 %v427_v4, %v419_v15  ;;  %v432_v31 = vadd.f32 %v428_v18, %v420_v33 }
 0x11e   :  { %v441_v57 = vadd.f32 %v437_v43, %v429_v45  ;;  %v442_v8 = vadd.f32 %v438_v56, %v430_v9  ;;  %v443_v63 = vadd.f32 %v439_v23, %v431_v22  ;;  %v444_v24 = vadd.f32 %v440_v55, %v432_v31 }
 0x120   :  { %911 = vtanh.f32 %v441_v57 }
 0x121   :  { %913 = vtanh.f32 %v442_v8 }
 0x122   :  { %915 = vtanh.f32 %v443_v63 }
 0x123   :  { %917 = vtanh.f32 %v444_v24 }
 0x12a   :  { %v912_v35 = vpop.eup %911 }
 0x12b   :  { %v914_v1 = vpop.eup %913  ;;  %v449_v50 = vmul.f32 0.5, %v912_v35 }
 0x12c   :  { %v451_v21 = vmul.f32 0.5, %v914_v1  ;;  %v916_v58 = vpop.eup %915 }
 0x12d   :  { %v450_v3 = vadd.f32 0.5, %v449_v50  ;;  %v918_v25 = vpop.eup %917 }
 0x12e   :  { %v452_v46 = vadd.f32 0.5, %v451_v21  ;;  %v453_v28 = vmul.f32 0.5, %v918_v25 }
 0x12f   :  { %v456_v44 = vmul.f32 %v916_v58, %v450_v3 }
 0x130   :  { %v455_v6 = vmul.f32 %v452_v46, %v1338_v29  ;;  %v454_v36 = vadd.f32 0.5, %v453_v28 }
 0x132   :  { %v1371_v42 = vadd.f32 %v456_v44, %v455_v6 }
 0x134   :  { %919 = vtanh.f32 %v1371_v42 }
 0x13e   :  { %v920_v52 = vpop.eup %919 }
 0x13f   :  { %v459_v4 = vmul.f32 %v920_v52, %v454_v36 }
 0x141   :  { %v476_v18 = vrot.slane %v459_v4, %v1232_v2  ;;  %v488_v39 = vrot.slane %v459_v4, %v1234_v11  ;;  %v500_v49 = vrot.slane %v459_v4, %v1240_v17  ;;  %v512_v15 = vrot.slane %v459_v4, %v1242_v27 }
 0x142   :  { %v524_v33 = vrot.slane %v459_v4, %v1250_v26 }
 0x143   :  { %v477_v29 = vmul.f32 %v476_v18, %v1221_v48  ;;  %v478_v43 = vmul.f32 %v476_v18, %v1203_v20  ;;  %v479_v56 = vmul.f32 %v476_v18, %v1218_v47  ;;  %v480_v23 = vmul.f32 %v476_v18, %v1285_v34 }
 0x144   :  { %v489_v55 = vmul.f32 %v488_v39, %v1225_v60  ;;  %v490_v45 = vmul.f32 %v488_v39, %v1214_v32  ;;  %v491_v9 = vmul.f32 %v488_v39, %v1230_v0  ;;  %v492_v22 = vmul.f32 %v488_v39, %v1289_v16 }
 0x145   :  { %v481_v31 = vadd.f32 %v477_v29, %v1111_v37  ;;  %v482_v57 = vadd.f32 %v478_v43, %v1141_v53  ;;  %v483_v8 = vadd.f32 %v479_v56, %v1171_v5  ;;  %v484_v63 = vadd.f32 %v480_v23, %v1201_v19 }
 0x146   :  { %v501_v24 = vmul.f32 %v500_v49, %v1237_v14  ;;  %v502_v35 = vmul.f32 %v500_v49, %v1223_v59  ;;  %v503_v1 = vmul.f32 %v500_v49, %v1264_v12  ;;  %v504_v50 = vmul.f32 %v500_v49, %v1292_v62 }
 0x147   :  { %v493_v21 = vadd.f32 %v489_v55, %v481_v31  ;;  %v494_v3 = vadd.f32 %v490_v45, %v482_v57  ;;  %v495_v58 = vadd.f32 %v491_v9, %v483_v8  ;;  %v496_v46 = vadd.f32 %v492_v22, %v484_v63 }
 0x148   :  { %v513_v37 = vmul.f32 %v512_v15, %v1258_v51  ;;  %v514_v53 = vmul.f32 %v512_v15, %v1246_v30  ;;  %v515_v5 = vmul.f32 %v512_v15, %v1280_v41  ;;  %v516_v19 = vmul.f32 %v512_v15, %v1297_v7 }
 0x149   :  { %v505_v44 = vadd.f32 %v501_v24, %v493_v21  ;;  %v506_v6 = vadd.f32 %v502_v35, %v494_v3  ;;  %v507_v25 = vadd.f32 %v503_v1, %v495_v58  ;;  %v508_v28 = vadd.f32 %v504_v50, %v496_v46 }
 0x14a   :  { %v525_v36 = vmul.f32 %v524_v33, %v1270_v40  ;;  %v526_v52 = vmul.f32 %v524_v33, %v1274_v61  ;;  %v527_v4 = vmul.f32 %v524_v33, %v1278_v10  ;;  %v528_v18 = vmul.f32 %v524_v33, %v1295_v13 }
 0x14b   :  { %v517_v39 = vadd.f32 %v513_v37, %v505_v44  ;;  %v518_v49 = vadd.f32 %v514_v53, %v506_v6  ;;  %v519_v29 = vadd.f32 %v515_v5, %v507_v25  ;;  %v520_v43 = vadd.f32 %v516_v19, %v508_v28 }
 0x14d   :  { %v529_v56 = vadd.f32 %v525_v36, %v517_v39  ;;  %v530_v23 = vadd.f32 %v526_v52, %v518_v49  ;;  %v531_v55 = vadd.f32 %v527_v4, %v519_v29  ;;  %v532_v15 = vadd.f32 %v528_v18, %v520_v43  ;;  %v1533_v49 = vld [vmem:[#allocation10_spill] sm:$0xff]  ;;  %v1534_v43 = vld [vmem:[#allocation13_spill] sm:$0xff] }
 0x14f   :  { %921 = vtanh.f32 %v529_v56 }
 0x150   :  { %923 = vtanh.f32 %v530_v23 }
 0x151   :  { %925 = vtanh.f32 %v531_v55 }
 0x152   :  { %927 = vtanh.f32 %v532_v15 }
 0x159   :  { %v922_v45 = vpop.eup %921 }
 0x15a   :  { %v924_v9 = vpop.eup %923  ;;  %v537_v22 = vmul.f32 0.5, %v922_v45 }
 0x15b   :  { %v539_v31 = vmul.f32 0.5, %v924_v9  ;;  %v926_v8 = vpop.eup %925 }
 0x15c   :  { %v538_v57 = vadd.f32 0.5, %v537_v22  ;;  %v928_v1 = vpop.eup %927 }
 0x15d   :  { %v540_v63 = vadd.f32 0.5, %v539_v31  ;;  %v541_v50 = vmul.f32 0.5, %v928_v1 }
 0x15e   :  { %v544_v33 = vmul.f32 %v926_v8, %v538_v57 }
 0x15f   :  { %v543_v24 = vmul.f32 %v540_v63, %v1371_v42  ;;  %v542_v21 = vadd.f32 0.5, %v541_v50 }
 0x161   :  { %v1404_v35 = vadd.f32 %v544_v33, %v543_v24 }
 0x163   :  { %929 = vtanh.f32 %v1404_v35 }
 0x16d   :  { %v930_v3 = vpop.eup %929 }
 0x16e   :  { %v547_v58 = vmul.f32 %v930_v3, %v542_v21 }
 0x170   :  { %v564_v46 = vrot.slane %v547_v58, %v1232_v2  ;;  %v576_v37 = vrot.slane %v547_v58, %v1234_v11  ;;  %v588_v53 = vrot.slane %v547_v58, %v1240_v17  ;;  %v600_v5 = vrot.slane %v547_v58, %v1242_v27 }
 0x171   :  { %v612_v19 = vrot.slane %v547_v58, %v1250_v26 }
 0x172   :  { %v565_v42 = vmul.f32 %v564_v46, %v1221_v48  ;;  %v566_v44 = vmul.f32 %v564_v46, %v1203_v20  ;;  %v567_v6 = vmul.f32 %v564_v46, %v1218_v47  ;;  %v568_v25 = vmul.f32 %v564_v46, %v1285_v34 }
 0x173   :  { %v577_v28 = vmul.f32 %v576_v37, %v1225_v60  ;;  %v578_v36 = vmul.f32 %v576_v37, %v1214_v32  ;;  %v579_v52 = vmul.f32 %v576_v37, %v1230_v0  ;;  %v580_v4 = vmul.f32 %v576_v37, %v1289_v16 }
 0x174   :  { %v569_v18 = vadd.f32 %v565_v42, %v1114_v38  ;;  %v570_v39 = vadd.f32 %v566_v44, %v1144_v54  ;;  %v571_v29 = vadd.f32 %v567_v6, %v1533_v49  ;;  %v572_v56 = vadd.f32 %v568_v25, %v1534_v43 }
 0x175   :  { %v589_v23 = vmul.f32 %v588_v53, %v1237_v14  ;;  %v590_v55 = vmul.f32 %v588_v53, %v1223_v59  ;;  %v591_v15 = vmul.f32 %v588_v53, %v1264_v12  ;;  %v592_v45 = vmul.f32 %v588_v53, %v1292_v62 }
 0x176   :  { %v581_v9 = vadd.f32 %v577_v28, %v569_v18  ;;  %v582_v22 = vadd.f32 %v578_v36, %v570_v39  ;;  %v583_v31 = vadd.f32 %v579_v52, %v571_v29  ;;  %v584_v57 = vadd.f32 %v580_v4, %v572_v56 }
 0x177   :  { %v601_v38 = vmul.f32 %v600_v5, %v1258_v51  ;;  %v602_v54 = vmul.f32 %v600_v5, %v1246_v30  ;;  %v603_v8 = vmul.f32 %v600_v5, %v1280_v41  ;;  %v604_v63 = vmul.f32 %v600_v5, %v1297_v7 }
 0x178   :  { %v593_v33 = vadd.f32 %v589_v23, %v581_v9  ;;  %v594_v24 = vadd.f32 %v590_v55, %v582_v22  ;;  %v595_v1 = vadd.f32 %v591_v15, %v583_v31  ;;  %v596_v50 = vadd.f32 %v592_v45, %v584_v57 }
 0x179   :  { %v613_v21 = vmul.f32 %v612_v19, %v1270_v40  ;;  %v614_v3 = vmul.f32 %v612_v19, %v1274_v61  ;;  %v615_v58 = vmul.f32 %v612_v19, %v1278_v10  ;;  %v616_v46 = vmul.f32 %v612_v19, %v1295_v13 }
 0x17a   :  { %v605_v37 = vadd.f32 %v601_v38, %v593_v33  ;;  %v606_v53 = vadd.f32 %v602_v54, %v594_v24  ;;  %v607_v42 = vadd.f32 %v603_v8, %v595_v1  ;;  %v608_v44 = vadd.f32 %v604_v63, %v596_v50  ;;  %v1535_v63 = vld [vmem:[#allocation11_spill] sm:$0xff]  ;;  %v1536_v24 = vld [vmem:[#allocation14_spill] sm:$0xff] }
 0x17c   :  { %v617_v6 = vadd.f32 %v613_v21, %v605_v37  ;;  %v618_v25 = vadd.f32 %v614_v3, %v606_v53  ;;  %v619_v28 = vadd.f32 %v615_v58, %v607_v42  ;;  %v620_v5 = vadd.f32 %v616_v46, %v608_v44  ;;  %v1537_v44 = vld [vmem:[#allocation6_spill] sm:$0xff] }
 0x17e   :  { %931 = vtanh.f32 %v617_v6 }
 0x17f   :  { %933 = vtanh.f32 %v618_v25 }
 0x180   :  { %935 = vtanh.f32 %v619_v28 }
 0x181   :  { %937 = vtanh.f32 %v620_v5 }
 0x188   :  { %v932_v36 = vpop.eup %931 }
 0x189   :  { %v934_v52 = vpop.eup %933  ;;  %v625_v4 = vmul.f32 0.5, %v932_v36  ;;  %v1538_v36 = vld [vmem:[#allocation8_spill] sm:$0xff] }
 0x18a   :  { %v627_v18 = vmul.f32 0.5, %v934_v52  ;;  %v936_v49 = vpop.eup %935 }
 0x18b   :  { %v626_v39 = vadd.f32 0.5, %v625_v4  ;;  %v938_v23 = vpop.eup %937 }
 0x18c   :  { %v628_v29 = vadd.f32 0.5, %v627_v18  ;;  %v629_v55 = vmul.f32 0.5, %v938_v23 }
 0x18d   :  { %v632_v19 = vmul.f32 %v936_v49, %v626_v39 }
 0x18e   :  { %v631_v43 = vmul.f32 %v628_v29, %v1404_v35  ;;  %v630_v15 = vadd.f32 0.5, %v629_v55 }
 0x190   :  { %v1437_v56 = vadd.f32 %v632_v19, %v631_v43 }
 0x192   :  { %939 = vtanh.f32 %v1437_v56 }
 0x19c   :  { %v940_v45 = vpop.eup %939 }
 0x19d   :  { %v635_v9 = vmul.f32 %v940_v45, %v630_v15 }
 0x19f   :  { %v652_v22 = vrot.slane %v635_v9, %v1232_v2  ;;  %v664_v31 = vrot.slane %v635_v9, %v1234_v11  ;;  %v676_v57 = vrot.slane %v635_v9, %v1240_v17  ;;  %v688_v8 = vrot.slane %v635_v9, %v1242_v27 }
 0x1a0   :  { %v700_v46 = vrot.slane %v635_v9, %v1250_v26 }
 0x1a1   :  { %v655_v38 = vmul.f32 %v652_v22, %v1218_v47  ;;  %v656_v54 = vmul.f32 %v652_v22, %v1285_v34  ;;  %v667_v35 = vmul.f32 %v664_v31, %v1230_v0  ;;  %v668_v50 = vmul.f32 %v664_v31, %v1289_v16 }
 0x1a2   :  { %v653_v21 = vmul.f32 %v652_v22, %v1221_v48  ;;  %v679_v3 = vmul.f32 %v676_v57, %v1264_v12  ;;  %v680_v58 = vmul.f32 %v676_v57, %v1292_v62  ;;  %v654_v37 = vmul.f32 %v652_v22, %v1203_v20 }
 0x1a3   :  { %v659_v33 = vadd.f32 %v655_v38, %v1535_v63  ;;  %v660_v1 = vadd.f32 %v656_v54, %v1536_v24  ;;  %v665_v25 = vmul.f32 %v664_v31, %v1225_v60  ;;  %v691_v28 = vmul.f32 %v688_v8, %v1280_v41 }
 0x1a4   :  { %v657_v6 = vadd.f32 %v653_v21, %v1537_v44  ;;  %v692_v5 = vmul.f32 %v688_v8, %v1297_v7  ;;  %v658_v52 = vadd.f32 %v654_v37, %v1538_v36  ;;  %v666_v4 = vmul.f32 %v664_v31, %v1214_v32 }
 0x1a5   :  { %v671_v53 = vadd.f32 %v667_v35, %v659_v33  ;;  %v672_v42 = vadd.f32 %v668_v50, %v660_v1  ;;  %v677_v29 = vmul.f32 %v676_v57, %v1237_v14  ;;  %v704_v19 = vmul.f32 %v700_v46, %v1295_v13 }
 0x1a6   :  { %v669_v49 = vadd.f32 %v665_v25, %v657_v6  ;;  %v670_v43 = vadd.f32 %v666_v4, %v658_v52  ;;  %v678_v23 = vmul.f32 %v676_v57, %v1223_v59  ;;  %v689_v55 = vmul.f32 %v688_v8, %v1258_v51 }
 0x1a7   :  { %v683_v18 = vadd.f32 %v679_v3, %v671_v53  ;;  %v684_v39 = vadd.f32 %v680_v58, %v672_v42  ;;  %v703_v22 = vmul.f32 %v700_v46, %v1278_v10  ;;  %v690_v31 = vmul.f32 %v688_v8, %v1246_v30 }
 0x1a8   :  { %v681_v9 = vadd.f32 %v677_v29, %v669_v49  ;;  %v682_v38 = vadd.f32 %v678_v23, %v670_v43  ;;  %v701_v63 = vmul.f32 %v700_v46, %v1270_v40  ;;  %v702_v1 = vmul.f32 %v700_v46, %v1274_v61 }
 0x1a9   :  { %v695_v15 = vadd.f32 %v691_v28, %v683_v18  ;;  %v696_v45 = vadd.f32 %v692_v5, %v684_v39 }
 0x1aa   :  { %v693_v35 = vadd.f32 %v689_v55, %v681_v9  ;;  %v694_v24 = vadd.f32 %v690_v31, %v682_v38  ;;  %v1540_v9 = vld [vmem:[#allocation9_spill] sm:$0xff]  ;;  %v1542_v38 = vld [vmem:[#allocation15_spill] sm:$0xff] }
 0x1ab   :  { %v708_v54 = vadd.f32 %v704_v19, %v696_v45  ;;  %v707_v33 = vadd.f32 %v703_v22, %v695_v15  ;;  %v1539_v45 = vld [vmem:[#allocation7_spill] sm:$0xff]  ;;  %v1541_v22 = vld [vmem:[#allocation12_spill] sm:$0xff] }
 0x1ac   :  { %v705_v50 = vadd.f32 %v701_v63, %v693_v35  ;;  %v706_v57 = vadd.f32 %v702_v1, %v694_v24 }
 0x1ae   :  { %941 = vtanh.f32 %v705_v50 }
 0x1af   :  { %943 = vtanh.f32 %v706_v57 }
 0x1b0   :  { %945 = vtanh.f32 %v707_v33 }
 0x1b1   :  { %947 = vtanh.f32 %v708_v54 }
 0x1b8   :  { %v942_v21 = vpop.eup %941 }
 0x1b9   :  { %v944_v3 = vpop.eup %943  ;;  %v713_v58 = vmul.f32 0.5, %v942_v21 }
 0x1ba   :  { %v715_v37 = vmul.f32 0.5, %v944_v3  ;;  %v946_v8 = vpop.eup %945 }
 0x1bb   :  { %v714_v53 = vadd.f32 0.5, %v713_v58  ;;  %v948_v46 = vpop.eup %947 }
 0x1bc   :  { %v716_v42 = vadd.f32 0.5, %v715_v37  ;;  %v717_v28 = vmul.f32 0.5, %v948_v46 }
 0x1bd   :  { %v720_v44 = vmul.f32 %v946_v8, %v714_v53 }
 0x1be   :  { %v719_v6 = vmul.f32 %v716_v42, %v1437_v56  ;;  %v718_v5 = vadd.f32 0.5, %v717_v28 }
 0x1c0   :  { %v1470_v25 = vadd.f32 %v720_v44, %v719_v6 }
 0x1c2   :  { %949 = vtanh.f32 %v1470_v25 }
 0x1cc   :  { %v950_v36 = vpop.eup %949 }
 0x1cd   :  { %v723_v52 = vmul.f32 %v950_v36, %v718_v5 }
 0x1cf   :  { %v740_v4 = vrot.slane %v723_v52, %v1232_v2  ;;  %v752_v18 = vrot.slane %v723_v52, %v1234_v11  ;;  %v764_v39 = vrot.slane %v723_v52, %v1240_v17  ;;  %v776_v49 = vrot.slane %v723_v52, %v1242_v27 }
 0x1d0   :  { %v788_v29 = vrot.slane %v723_v52, %v1250_v26 }
 0x1d1   :  { %v741_v56 = vmul.f32 %v740_v4, %v1221_v48  ;;  %v742_v19 = vmul.f32 %v740_v4, %v1203_v20  ;;  %v743_v43 = vmul.f32 %v740_v4, %v1218_v47  ;;  %v744_v23 = vmul.f32 %v740_v4, %v1285_v34 }
 0x1d2   :  { %v753_v55 = vmul.f32 %v752_v18, %v1225_v60  ;;  %v754_v15 = vmul.f32 %v752_v18, %v1214_v32  ;;  %v755_v11 = vmul.f32 %v752_v18, %v1230_v0  ;;  %v756_v17 = vmul.f32 %v752_v18, %v1289_v16 }
 0x1d3   :  { %v745_v27 = vadd.f32 %v741_v56, %v1539_v45  ;;  %v746_v26 = vadd.f32 %v742_v19, %v1540_v9  ;;  %v747_v48 = vadd.f32 %v743_v43, %v1541_v22  ;;  %v748_v20 = vadd.f32 %v744_v23, %v1542_v38 }
 0x1d4   :  { %v765_v47 = vmul.f32 %v764_v39, %v1237_v14  ;;  %v766_v34 = vmul.f32 %v764_v39, %v1223_v59  ;;  %v767_v60 = vmul.f32 %v764_v39, %v1264_v12  ;;  %v768_v32 = vmul.f32 %v764_v39, %v1292_v62 }
 0x1d5   :  { %v757_v31 = vadd.f32 %v753_v55, %v745_v27  ;;  %v758_v0 = vadd.f32 %v754_v15, %v746_v26  ;;  %v759_v54 = vadd.f32 %v755_v11, %v747_v48  ;;  %v760_v16 = vadd.f32 %v756_v17, %v748_v20 }
 0x1d6   :  { %v777_v35 = vmul.f32 %v776_v49, %v1258_v51  ;;  %v778_v63 = vmul.f32 %v776_v49, %v1246_v30  ;;  %v779_v33 = vmul.f32 %v776_v49, %v1280_v41  ;;  %v780_v24 = vmul.f32 %v776_v49, %v1297_v7  ;;  %v166_v49 = vpop.permute.xlu1 %165 }
 0x1d7   :  { %v769_v1 = vadd.f32 %v765_v47, %v757_v31  ;;  %v770_v14 = vadd.f32 %v766_v34, %v758_v0  ;;  %v771_v50 = vadd.f32 %v767_v60, %v759_v54  ;;  %v772_v59 = vadd.f32 %v768_v32, %v760_v16 }
 0x1d8   :  { %v789_v12 = vmul.f32 %v788_v29, %v1270_v40  ;;  %v790_v62 = vmul.f32 %v788_v29, %v1274_v61  ;;  %v791_v57 = vmul.f32 %v788_v29, %v1278_v10  ;;  %v792_v21 = vmul.f32 %v788_v29, %v1295_v13 }
 0x1d9   :  { %v781_v3 = vadd.f32 %v777_v35, %v769_v1  ;;  %v782_v51 = vadd.f32 %v778_v63, %v770_v14  ;;  %v783_v58 = vadd.f32 %v779_v33, %v771_v50  ;;  %v784_v30 = vadd.f32 %v780_v24, %v772_v59 }
 0x1da   :  { %v824_v55 = vpop.permute.xlu1 %823 }
 0x1db   :  { %v793_v37 = vadd.f32 %v789_v12, %v781_v3  ;;  %v794_v41 = vadd.f32 %v790_v62, %v782_v51  ;;  %v795_v53 = vadd.f32 %v791_v57, %v783_v58  ;;  %v796_v7 = vadd.f32 %v792_v21, %v784_v30 }
 0x1dd   :  { %951 = vtanh.f32 %v793_v37 }
 0x1de   :  { %953 = vtanh.f32 %v794_v41 }
 0x1df   :  { %955 = vtanh.f32 %v795_v53 }
 0x1e0   :  { %957 = vtanh.f32 %v796_v7 }
 0x1e7   :  { %v952_v8 = vpop.eup %951 }
 0x1e8   :  { %v954_v42 = vpop.eup %953  ;;  %v801_v40 = vmul.f32 0.5, %v952_v8 }
 0x1e9   :  { %v803_v61 = vmul.f32 0.5, %v954_v42  ;;  %v956_v10 = vpop.eup %955 }
 0x1ea   :  { %v802_v44 = vadd.f32 0.5, %v801_v40  ;;  %v958_v5 = vpop.eup %957 }
 0x1eb   :  { %v804_v6 = vadd.f32 0.5, %v803_v61  ;;  %v805_v36 = vmul.f32 0.5, %v958_v5 }
 0x1ec   :  { %v808_v13 = vmul.f32 %v956_v10, %v802_v44 }
 0x1ed   :  { %v807_v46 = vmul.f32 %v804_v6, %v1470_v25  ;;  %v806_v52 = vadd.f32 0.5, %v805_v36  ;;  %v829_v25 = vrot.slane %v824_v55, %v1232_v2 }
 0x1ef   :  { %v809_v28 = vadd.f32 %v808_v13, %v807_v46 }
 0x1f1   :  { %959 = vtanh.f32 %v809_v28 }
 0x1fb   :  { %v960_v4 = vpop.eup %959 }
 0x1fc   :  { %v811_v18 = vmul.f32 %v960_v4, %v806_v52 }
 0x1fe   :  { %v812_v39 = vmax.f32 %v811_v18, 0.0 }
 0x200   :  { %v813_v29 = vmul.f32 %v812_v39, %v166_v49 }
 0x202   :  { %v814_v56 = vrot.slane %v813_v29, 4 }
 0x204   :  { %v815_v19 = vadd.f32 %v814_v56, %v813_v29 }
 0x206   :  { %v816_v43 = vrot.slane %v815_v19, 2 }
 0x208   :  { %v817_v23 = vadd.f32 %v816_v43, %v815_v19 }
 0x20a   :  { %v818_v15 = vrot.slane %v817_v23, 1 }
 0x20c   :  { %v819_v11 = vadd.f32 %v818_v15, %v817_v23 }
 0x20e   :  { %v830_v17 = vadd.f32 %v829_v25, %v819_v11 }
 0x210   :  { %831 = vst [vmem:[#allocation3] sm:$0x1] %v830_v17 }
 0x211   :  { %972 = shalt.err (!%p969_p4)
}
 0x212   :  { %s973_s16 = scalar_lea.hbm %s1522_s6, 16 }
 0x213   :  { %p974_p5 = scmp.ne.s32.totalorder %s1522_s6, %s973_s16  ;;  %p977_p6 = scmp.lt.u32.totalorder %s973_s16, %s1522_s6 }
 0x215   :  { %p979_p7 = pnand %p977_p6, %p974_p5 }
 0x217   :  { %982 = shalt.err (!%p979_p7)
}
 0x218   :  { %841 = dma.vmem_to_hbm [thread:$0]  %s839_s11, 16, %s1522_s6, [#allocation4]  }
 0x219   :  { %983 = dma.done.wait [#allocation4], 16  }
 0x21a   :  { %984 = vsyncadd [#allocation4], 4294967280 }
 0x21b   :  { %845 = vsyncpa [#allocation4], 1 }

</bundles_post_ra>
